<compile_context>
chip_gen: v7x
topology: tpu7x:2x2x1
jax: 0.10.0
libtpu: 0.0.40
codegen_flags: <defaults>
</compile_context>

<pallas_src>
import functools
import math

import jax
import jax.numpy as jnp
from jax.experimental import pallas as pl
from jax.experimental.pallas import tpu as pltpu


_VMEM_LIMIT_BYTES = 32 * 1024 * 1024   # safe on v5e/v6e (128 MiB) and v7x (64 MiB physical)
_BLOCK_BUDGET_BYTES = 1 << 20          # ~1 MiB per activation block (before double buffering)


# ----------------------------- small helpers --------------------------------

def _cmatmul(w, x):
    """Channel-major matmul: w (Co, Ci) @ x (Ci, R) -> (Co, R) in f32.

    For tiny channel counts (the case in this module) the MXU is ~0.1% occupied,
    so use unrolled VPU broadcast multiply-adds instead; fall back to the MXU for
    realistic channel counts.
    """
    co, ci = w.shape
    if ci >= 16:
        return jnp.dot(w.astype(jnp.float32), x, preferred_element_type=jnp.float32)
    acc = w[:, 0:1] * x[0:1, :]
    for c in range(1, ci):
        acc = acc + w[:, c:c + 1] * x[c:c + 1, :]
    return acc


def _pick_depth_tile(D, HW, cmax, budget_bytes=_BLOCK_BUDGET_BYTES):
    """Largest depth tile whose flattened block fits the VMEM budget and keeps the
    lane dimension a multiple of 128 (or the full extent)."""
    candidates = [td for td in range(1, D + 1)
                  if D % td == 0 and (td == D or (td * HW) % 128 == 0)]
    fitting = [td for td in candidates if (td + 2) * HW * cmax * 4 <= budget_bytes]
    return max(fitting) if fitting else min(candidates)


def _pick_spatial_tile(S, cmax, budget_bytes=_BLOCK_BUDGET_BYTES):
    """Largest 128-multiple divisor of S that fits the VMEM budget."""
    candidates = [t for t in range(128, S + 1, 128) if S % t == 0]
    if not candidates:
        return S
    fitting = [t for t in candidates if t * cmax * 4 <= budget_bytes]
    return max(fitting) if fitting else min(candidates)


# ----------------------------- Pallas kernels -------------------------------

def _bottleneck_kernel(TD, H, W, has_res, xh_ref, mask_ref, w1_ref, b1_ref,
                       wD_ref, bD_ref, wH_ref, bH_ref, wW_ref, bW_ref,
                       w5_ref, b5_ref, *rest):
    """Fused asym_bottleneck_module for one (sample, depth-tile).

    xh_ref:  (Cin, (TD+2)*H*W) depth-haloed, spatially flattened input (channel major)
    outputs: y (out_ch, TD*H*W) pre-GroupNorm activation,
             s1/s2 (out_ch, 1) per-channel sum / sum-of-squares accumulated over depth tiles.
    """
    if has_res:
        wr_ref, br_ref, y_ref, s1_ref, s2_ref, pad_ref = rest
    else:
        y_ref, s1_ref, s2_ref, pad_ref = rest

    f32 = jnp.float32
    HW = H * W
    R = TD * HW
    Rh = (TD + 2) * HW

    x_h = xh_ref[...].astype(f32)                                      # (Cin, Rh)

    # --- 1x1x1 conv + ReLU (channel-major) ---
    h = jnp.maximum(_cmatmul(w1_ref[...], x_h) + b1_ref[...], 0.0)     # (mid, Rh)

    # Zero the halo columns that correspond to the *global* zero padding along D
    # (PyTorch zero-pads the conv input h, not x, so relu(b1) must not leak in).
    dt = pl.program_id(1)
    col = jax.lax.broadcasted_iota(jnp.int32, (1, Rh), 1)
    front_pad = jnp.logical_and(col < HW, dt == 0)
    back_pad = jnp.logical_and(col >= HW + R, dt == pl.num_programs(1) - 1)
    h = jnp.where(jnp.logical_or(front_pad, back_pad), 0.0, h)

    # --- (3,1,1) conv along D: taps are contiguous column windows of the halo ---
    g = (_cmatmul(wD_ref[0], h[:, 0:R])
         + _cmatmul(wD_ref[1], h[:, HW:HW + R])
         + _cmatmul(wD_ref[2], h[:, 2 * HW:2 * HW + R])
         + bD_ref[...])                                                # (mid, R)

    # Zero-padded VMEM scratch used to build the +/- shifted taps of the H / W convs
    # (shifts stay entirely in VMEM -- no shifted HBM copies).
    zpad = jnp.zeros((pad_ref.shape[0], W), f32)
    pad_ref[:, 0:W] = zpad
    pad_ref[:, R + W:R + 2 * W] = zpad

    def taps(v, stride, m_prev, m_next):
        pad_ref[:, W:W + R] = v
        prev = pad_ref[:, W - stride:W - stride + R] * mask_ref[m_prev:m_prev + 1, :]
        nxt = pad_ref[:, W + stride:W + stride + R] * mask_ref[m_next:m_next + 1, :]
        return prev, nxt

    # --- (1,3,1) conv along H ---
    prev, nxt = taps(g, W, 0, 1)
    g = (_cmatmul(wH_ref[0], prev) + _cmatmul(wH_ref[1], g)
         + _cmatmul(wH_ref[2], nxt) + bH_ref[...])

    # --- (1,1,3) conv along W + ReLU ---
    prev, nxt = taps(g, 1, 2, 3)
    g = (_cmatmul(wW_ref[0], prev) + _cmatmul(wW_ref[1], g)
         + _cmatmul(wW_ref[2], nxt) + bW_ref[...])
    g = jnp.maximum(g, 0.0)

    # --- final 1x1x1 conv + ReLU ---
    a = jnp.maximum(_cmatmul(w5_ref[...], g) + b5_ref[...], 0.0)       # (out_ch, R)

    # --- residual branch ---
    x_in = x_h[:, HW:HW + R]                                           # (Cin, R)
    if has_res:
        res = _cmatmul(wr_ref[...], x_in) + br_ref[...]
    else:
        res = x_in          # identity residual: free VPU add, no eye matmul
    out = a + res                                                      # (out_ch, R)

    y_ref[...] = out.astype(y_ref.dtype)

    # --- per-channel GroupNorm statistics, accumulated across depth tiles ---
    @pl.when(dt == 0)
    def _():
        s1_ref[...] = jnp.zeros_like(s1_ref)
        s2_ref[...] = jnp.zeros_like(s2_ref)

    s1_ref[...] += jnp.sum(out, axis=1, keepdims=True)
    s2_ref[...] += jnp.sum(out * out, axis=1, keepdims=True)


def _gn_apply_merge_kernel(y_ref, scale_ref, shift_ref, wm_ref, bm_ref, o_ref, b_ref):
    """GroupNorm affine + ReLU + 1x1 merge conv for one (sample, spatial tile).

    Channel-major blocks: y (C, TS); outputs x_out (C, TS) and x_bias (bias_size, TS),
    both lane-dense and already in the final NC(S) layout.
    """
    y = y_ref[...].astype(jnp.float32)                                 # (C, TS)
    o = jnp.maximum(y * scale_ref[...] + shift_ref[...], 0.0)
    o_ref[...] = o.astype(o_ref.dtype)
    xb = _cmatmul(wm_ref[...], o) + bm_ref[...]                        # (bias_size, TS)
    b_ref[...] = xb.astype(b_ref.dtype)


# ------------------------------ forward pass --------------------------------

def conv_bias2_forward(x, p, num_groups, eps=1e-5):
    """Equivalent of conv_bias2.forward; x is NCDHW, returns (x_bias, x_out) in NCDHW."""
    N, Cin, D, H, W = x.shape
    mid = p['w1'].shape[0]
    out_ch = p['w5'].shape[0]
    bias_size = p['wm'].shape[0]
    has_res = p['wr'] is not None

    HW = H * W
    S = D * HW
    cmax = max(Cin, mid, out_ch)

    TD = _pick_depth_tile(D, HW, cmax)
    DT = D // TD
    R = TD * HW
    Rh = (TD + 2) * HW

    # Depth-haloed, spatially-flattened input windows: (N, DT, Cin, (TD+2)*H*W).
    # Only the (small, Cin-channel) raw input is duplicated by the halo; all
    # intermediate activations live purely in VMEM.
    xp = jnp.pad(x, ((0, 0), (0, 0), (1, 1), (0, 0), (0, 0)))
    if DT == 1:
        xw = xp[:, None]
    else:
        xw = jnp.stack([xp[:, :, i * TD:i * TD + TD + 2] for i in range(DT)], axis=1)
    xw = xw.reshape(N, DT, Cin, Rh)

    # Line-boundary "keep" masks for the H / W taps (identical for every tile).
    r = jnp.arange(R)
    h_idx = (r // W) % H
    w_idx = r % W
    masks = jnp.stack([h_idx != 0, h_idx != H - 1, w_idx != 0, w_idx != W - 1],
                      axis=0).astype(jnp.float32)                      # (4, R)

    in_specs = [
        pl.BlockSpec((None, None, Cin, Rh), lambda n, t: (n, t, 0, 0)),
        pl.BlockSpec((4, R), lambda n, t: (0, 0)),
        pl.BlockSpec((mid, Cin), lambda n, t: (0, 0)),
        pl.BlockSpec((mid, 1), lambda n, t: (0, 0)),
        pl.BlockSpec((3, mid, mid), lambda n, t: (0, 0, 0)),
        pl.BlockSpec((mid, 1), lambda n, t: (0, 0)),
        pl.BlockSpec((3, mid, mid), lambda n, t: (0, 0, 0)),
        pl.BlockSpec((mid, 1), lambda n, t: (0, 0)),
        pl.BlockSpec((3, mid, mid), lambda n, t: (0, 0, 0)),
        pl.BlockSpec((mid, 1), lambda n, t: (0, 0)),
        pl.BlockSpec((out_ch, mid), lambda n, t: (0, 0)),
        pl.BlockSpec((out_ch, 1), lambda n, t: (0, 0)),
    ]
    args = [xw, masks, p['w1'], p['b1'], p['wD'], p['bD'], p['wH'], p['bH'],
            p['wW'], p['bW'], p['w5'], p['b5']]
    if has_res:
        in_specs += [pl.BlockSpec((out_ch, Cin), lambda n, t: (0, 0)),
                     pl.BlockSpec((out_ch, 1), lambda n, t: (0, 0))]
        args += [p['wr'], p['br']]

    y_t, s1, s2 = pl.pallas_call(
        functools.partial(_bottleneck_kernel, TD, H, W, has_res),
        grid=(N, DT),
        in_specs=in_specs,
        out_specs=(pl.BlockSpec((None, out_ch, R), lambda n, t: (n, 0, t)),
                   pl.BlockSpec((None, out_ch, 1), lambda n, t: (n, 0, 0)),
                   pl.BlockSpec((None, out_ch, 1), lambda n, t: (n, 0, 0))),
        out_shape=(jax.ShapeDtypeStruct((N, out_ch, S), x.dtype),
                   jax.ShapeDtypeStruct((N, out_ch, 1), jnp.float32),
                   jax.ShapeDtypeStruct((N, out_ch, 1), jnp.float32)),
        scratch_shapes=[pltpu.VMEM((mid, R + 2 * W), jnp.float32)],
        compiler_params=pltpu.CompilerParams(
            # depth axis is a reduction for the GroupNorm statistics -> "arbitrary"
            dimension_semantics=("parallel", "arbitrary"),
            vmem_limit_bytes=_VMEM_LIMIT_BYTES),
    )(*args)

    # --- GroupNorm statistics -> per-channel scale / shift (tiny O(N*C) XLA ops) ---
    G = num_groups
    gs = out_ch // G
    cnt = float(gs * S)
    sum1 = s1.reshape(N, G, gs).sum(axis=2)
    sum2 = s2.reshape(N, G, gs).sum(axis=2)
    mean = sum1 / cnt
    # NOTE: one-pass E[x^2]-E[x]^2 in f32 (stats are fused into the conv kernel);
    # clamp guards against tiny negative values.  Switch to a two-pass / Welford
    # stats kernel if S becomes extremely large.
    var = jnp.maximum(sum2 / cnt - mean * mean, 0.0)
    inv = jax.lax.rsqrt(var + eps)
    scale = jnp.repeat(inv, gs, axis=1) * p['gamma'][None, :]           # (N, C)
    shift = p['beta'][None, :] - jnp.repeat(mean, gs, axis=1) * scale   # (N, C)
    scale = scale.reshape(N, out_ch, 1).astype(jnp.float32)
    shift = shift.reshape(N, out_ch, 1).astype(jnp.float32)

    # --- GroupNorm affine + ReLU + 1x1 merge conv, tiled over spatial positions ---
    TS = _pick_spatial_tile(S, out_ch)
    ST = S // TS
    x_out_t, x_bias_t = pl.pallas_call(
        _gn_apply_merge_kernel,
        grid=(N, ST),
        in_specs=[pl.BlockSpec((None, out_ch, TS), lambda n, t: (n, 0, t)),
                  pl.BlockSpec((None, out_ch, 1), lambda n, t: (n, 0, 0)),
                  pl.BlockSpec((None, out_ch, 1), lambda n, t: (n, 0, 0)),
                  pl.BlockSpec((bias_size, out_ch), lambda n, t: (0, 0)),
                  pl.BlockSpec((bias_size, 1), lambda n, t: (0, 0))],
        out_specs=(pl.BlockSpec((None, out_ch, TS), lambda n, t: (n, 0, t)),
                   pl.BlockSpec((None, bias_size, TS), lambda n, t: (n, 0, t))),
        out_shape=(jax.ShapeDtypeStruct((N, out_ch, S), x.dtype),
                   jax.ShapeDtypeStruct((N, bias_size, S), x.dtype)),
        compiler_params=pltpu.CompilerParams(
            dimension_semantics=("parallel", "parallel"),
            vmem_limit_bytes=_VMEM_LIMIT_BYTES),
    )(y_t, scale, shift, p['wm'], p['bm'])

    # Outputs are already channel-major (NCDHW flattened): plain reshapes, no transpose.
    x_out = x_out_t.reshape(N, out_ch, D, H, W)
    x_bias = x_bias_t.reshape(N, bias_size, D, H, W)
    return x_bias, x_out


# ------------------------------ parameter init -------------------------------

def init_params(key, in_ch, out_ch, bias_size=1, compress_factor=2):
    mid = in_ch // compress_factor
    ks = jax.random.split(key, 16)

    def w(k, shape, fan_in):
        return jax.random.normal(k, shape, jnp.float32) / math.sqrt(float(fan_in))

    # Weights stored channel-major (out, in) like PyTorch; biases as (out, 1).
    p = {
        'w1': w(ks[0], (mid, in_ch), in_ch),
        'b1': 0.1 * jax.random.normal(ks[1], (mid, 1), jnp.float32),
        'wD': w(ks[2], (3, mid, mid), 3 * mid),
        'bD': 0.1 * jax.random.normal(ks[3], (mid, 1), jnp.float32),
        'wH': w(ks[4], (3, mid, mid), 3 * mid),
        'bH': 0.1 * jax.random.normal(ks[5], (mid, 1), jnp.float32),
        'wW': w(ks[6], (3, mid, mid), 3 * mid),
        'bW': 0.1 * jax.random.normal(ks[7], (mid, 1), jnp.float32),
        'w5': w(ks[8], (out_ch, mid), mid),
        'b5': 0.1 * jax.random.normal(ks[9], (out_ch, 1), jnp.float32),
        'gamma': 1.0 + 0.1 * jax.random.normal(ks[12], (out_ch,), jnp.float32),
        'beta': 0.1 * jax.random.normal(ks[13], (out_ch,), jnp.float32),
        'wm': w(ks[14], (bias_size, out_ch), out_ch),
        'bm': 0.1 * jax.random.normal(ks[15], (bias_size, 1), jnp.float32),
    }
    if in_ch != out_ch:
        p['wr'] = w(ks[10], (out_ch, in_ch), in_ch)
        p['br'] = 0.1 * jax.random.normal(ks[11], (out_ch, 1), jnp.float32)
    else:
        p['wr'] = None
        p['br'] = None
    return p


# --------------------------- pure-JAX reference ------------------------------

def _ref_conv(v, w, b, pad):
    out = jax.lax.conv_general_dilated(
        v, w, window_strides=(1, 1, 1), padding=pad,
        dimension_numbers=('NCDHW', 'OIDHW', 'NCDHW'),
        precision=jax.lax.Precision.HIGHEST)
    return out + b.reshape(1, -1, 1, 1, 1)


def _reference_forward(x, p, num_groups, eps=1e-5):
    relu = lambda v: jnp.maximum(v, 0.0)
    zero = [(0, 0)] * 3
    h = relu(_ref_conv(x, p['w1'][:, :, None, None, None], p['b1'], zero))
    wD = jnp.transpose(p['wD'], (1, 2, 0))[:, :, :, None, None]
    h = _ref_conv(h, wD, p['bD'], [(1, 1), (0, 0), (0, 0)])
    wH = jnp.transpose(p['wH'], (1, 2, 0))[:, :, None, :, None]
    h = _ref_conv(h, wH, p['bH'], [(0, 0), (1, 1), (0, 0)])
    wW = jnp.transpose(p['wW'], (1, 2, 0))[:, :, None, None, :]
    h = relu(_ref_conv(h, wW, p['bW'], [(0, 0), (0, 0), (1, 1)]))
    h = relu(_ref_conv(h, p['w5'][:, :, None, None, None], p['b5'], zero))
    if p['wr'] is not None:
        res = _ref_conv(x, p['wr'][:, :, None, None, None], p['br'], zero)
    else:
        res = x
    y = h + res
    N, C, D, H, W = y.shape
    yg = y.reshape(N, num_groups, -1)
    mean = yg.mean(axis=2, keepdims=True)
    var = ((yg - mean) ** 2).mean(axis=2, keepdims=True)
    yn = ((yg - mean) / jnp.sqrt(var + eps)).reshape(N, C, D, H, W)
    yn = relu(yn * p['gamma'].reshape(1, C, 1, 1, 1) + p['beta'].reshape(1, C, 1, 1, 1))
    xb = _ref_conv(yn, p['wm'][:, :, None, None, None], p['bm'], zero)
    return xb, yn


# ---------------------------------- main -------------------------------------

if __name__ == "__main__":
    key = jax.random.PRNGKey(0)
    N, in_ch, out_ch = 2, 4, 8
    D = H = W = 8
    bias_size = 1
    num_groups = out_ch // 4

    kp, kx = jax.random.split(key)
    params = init_params(kp, in_ch, out_ch, bias_size)
    x = jax.random.normal(kx, (N, in_ch, D, H, W), jnp.float32)

    fwd = jax.jit(functools.partial(conv_bias2_forward, num_groups=num_groups))
    x_bias, x_out = fwd(x, params)
    jax.block_until_ready((x_bias, x_out))

    assert x_bias.shape == (N, bias_size, D, H, W), x_bias.shape
    assert x_out.shape == (N, out_ch, D, H, W), x_out.shape
    assert x_bias.dtype == jnp.float32 and x_out.dtype == jnp.float32

    # numerical check against a pure-JAX (XLA) reference of the same module
    ref_bias, ref_out = _reference_forward(x, params, num_groups)
    assert jnp.allclose(x_out, ref_out, rtol=1e-3, atol=1e-3), \
        float(jnp.max(jnp.abs(x_out - ref_out)))
    assert jnp.allclose(x_bias, ref_bias, rtol=1e-3, atol=1e-3), \
        float(jnp.max(jnp.abs(x_bias - ref_bias)))
    print("KERNEL_OK")
</pallas_src>

<mosaic_0001>
module attributes {stable_mosaic.version = 11 : i64} {
  func.func @_bottleneck_kernel(%arg0: i32, %arg1: i32, %arg2: memref<1x1x4x640xf32, #tpu.memory_space<vmem>>, %arg3: memref<4x512xf32, #tpu.memory_space<vmem>>, %arg4: memref<2x4xf32, #tpu.memory_space<vmem>>, %arg5: memref<2x1xf32, #tpu.memory_space<vmem>>, %arg6: memref<3x2x2xf32, #tpu.memory_space<vmem>>, %arg7: memref<2x1xf32, #tpu.memory_space<vmem>>, %arg8: memref<3x2x2xf32, #tpu.memory_space<vmem>>, %arg9: memref<2x1xf32, #tpu.memory_space<vmem>>, %arg10: memref<3x2x2xf32, #tpu.memory_space<vmem>>, %arg11: memref<2x1xf32, #tpu.memory_space<vmem>>, %arg12: memref<8x2xf32, #tpu.memory_space<vmem>>, %arg13: memref<8x1xf32, #tpu.memory_space<vmem>>, %arg14: memref<8x4xf32, #tpu.memory_space<vmem>>, %arg15: memref<8x1xf32, #tpu.memory_space<vmem>>, %arg16: memref<1x8x512xf32, #tpu.memory_space<vmem>>, %arg17: memref<1x8x1xf32, #tpu.memory_space<vmem>>, %arg18: memref<1x8x1xf32, #tpu.memory_space<vmem>>, %arg19: memref<2x528xf32, #tpu.memory_space<vmem>>) attributes {dimension_semantics = [#tpu.dimension_semantics<parallel>, #tpu.dimension_semantics<arbitrary>], iteration_bounds = array<i64: 2, 1>, scalar_prefetch = 0 : i64, scratch_operands = 1 : i64, tpu.core_type = #tpu.core_type<tc>, window_params = [{transform_indices = @transform_0, window_bounds = array<i64: 1, 1, 4, 640>}, {pipeline_mode = #tpu.pipeline_mode<synchronous>, transform_indices = @transform_1, window_bounds = array<i64: 4, 512>}, {pipeline_mode = #tpu.pipeline_mode<synchronous>, transform_indices = @transform_2, window_bounds = array<i64: 2, 4>}, {pipeline_mode = #tpu.pipeline_mode<synchronous>, transform_indices = @transform_3, window_bounds = array<i64: 2, 1>}, {pipeline_mode = #tpu.pipeline_mode<synchronous>, transform_indices = @transform_4, window_bounds = array<i64: 3, 2, 2>}, {pipeline_mode = #tpu.pipeline_mode<synchronous>, transform_indices = @transform_5, window_bounds = array<i64: 2, 1>}, {pipeline_mode = #tpu.pipeline_mode<synchronous>, transform_indices = @transform_6, window_bounds = array<i64: 3, 2, 2>}, {pipeline_mode = #tpu.pipeline_mode<synchronous>, transform_indices = @transform_7, window_bounds = array<i64: 2, 1>}, {pipeline_mode = #tpu.pipeline_mode<synchronous>, transform_indices = @transform_8, window_bounds = array<i64: 3, 2, 2>}, {pipeline_mode = #tpu.pipeline_mode<synchronous>, transform_indices = @transform_9, window_bounds = array<i64: 2, 1>}, {pipeline_mode = #tpu.pipeline_mode<synchronous>, transform_indices = @transform_10, window_bounds = array<i64: 8, 2>}, {pipeline_mode = #tpu.pipeline_mode<synchronous>, transform_indices = @transform_11, window_bounds = array<i64: 8, 1>}, {pipeline_mode = #tpu.pipeline_mode<synchronous>, transform_indices = @transform_12, window_bounds = array<i64: 8, 4>}, {pipeline_mode = #tpu.pipeline_mode<synchronous>, transform_indices = @transform_13, window_bounds = array<i64: 8, 1>}, {transform_indices = @transform_14, window_bounds = array<i64: 1, 8, 512>}, {transform_indices = @transform_15, window_bounds = array<i64: 1, 8, 1>}, {transform_indices = @transform_16, window_bounds = array<i64: 1, 8, 1>}]} {
    %c0 = arith.constant 0 : index
    %c0_0 = arith.constant 0 : index
    %c0_1 = arith.constant 0 : index
    %c0_2 = arith.constant 0 : index
    %0 = vector.load %arg2[%c0, %c0_0, %c0_1, %c0_2] : memref<1x1x4x640xf32, #tpu.memory_space<vmem>>, vector<1x1x4x640xf32>
    %1 = vector.shape_cast %0 : vector<1x1x4x640xf32> to vector<4x640xf32>
    %c0_3 = arith.constant 0 : index
    %c0_4 = arith.constant 0 : index
    %2 = vector.load %arg4[%c0_3, %c0_4] : memref<2x4xf32, #tpu.memory_space<vmem>>, vector<2x4xf32>
    %3 = vector.extract_strided_slice %2 {offsets = [0, 0], sizes = [2, 1], strides = [1, 1]} : vector<2x4xf32> to vector<2x1xf32>
    %4 = vector.extract_strided_slice %1 {offsets = [0, 0], sizes = [1, 640], strides = [1, 1]} : vector<4x640xf32> to vector<1x640xf32>
    %5 = vector.broadcast %3 : vector<2x1xf32> to vector<2x640xf32>
    %6 = vector.broadcast %4 : vector<1x640xf32> to vector<2x640xf32>
    %7 = arith.mulf %5, %6 : vector<2x640xf32>
    %8 = vector.extract_strided_slice %2 {offsets = [0, 1], sizes = [2, 1], strides = [1, 1]} : vector<2x4xf32> to vector<2x1xf32>
    %9 = vector.extract_strided_slice %1 {offsets = [1, 0], sizes = [1, 640], strides = [1, 1]} : vector<4x640xf32> to vector<1x640xf32>
    %10 = vector.broadcast %8 : vector<2x1xf32> to vector<2x640xf32>
    %11 = vector.broadcast %9 : vector<1x640xf32> to vector<2x640xf32>
    %12 = arith.mulf %10, %11 : vector<2x640xf32>
    %13 = arith.addf %7, %12 : vector<2x640xf32>
    %14 = vector.extract_strided_slice %2 {offsets = [0, 2], sizes = [2, 1], strides = [1, 1]} : vector<2x4xf32> to vector<2x1xf32>
    %15 = vector.extract_strided_slice %1 {offsets = [2, 0], sizes = [1, 640], strides = [1, 1]} : vector<4x640xf32> to vector<1x640xf32>
    %16 = vector.broadcast %14 : vector<2x1xf32> to vector<2x640xf32>
    %17 = vector.broadcast %15 : vector<1x640xf32> to vector<2x640xf32>
    %18 = arith.mulf %16, %17 : vector<2x640xf32>
    %19 = arith.addf %13, %18 : vector<2x640xf32>
    %20 = vector.extract_strided_slice %2 {offsets = [0, 3], sizes = [2, 1], strides = [1, 1]} : vector<2x4xf32> to vector<2x1xf32>
    %21 = vector.extract_strided_slice %1 {offsets = [3, 0], sizes = [1, 640], strides = [1, 1]} : vector<4x640xf32> to vector<1x640xf32>
    %22 = vector.broadcast %20 : vector<2x1xf32> to vector<2x640xf32>
    %23 = vector.broadcast %21 : vector<1x640xf32> to vector<2x640xf32>
    %24 = arith.mulf %22, %23 : vector<2x640xf32>
    %25 = arith.addf %19, %24 : vector<2x640xf32>
    %c0_5 = arith.constant 0 : index
    %c0_6 = arith.constant 0 : index
    %26 = vector.load %arg5[%c0_5, %c0_6] : memref<2x1xf32, #tpu.memory_space<vmem>>, vector<2x1xf32>
    %27 = vector.broadcast %26 : vector<2x1xf32> to vector<2x640xf32>
    %28 = arith.addf %25, %27 : vector<2x640xf32>
    %cst = arith.constant 0.000000e+00 : f32
    %29 = vector.broadcast %cst : f32 to vector<2x640xf32>
    %30 = arith.maximumf %28, %29 : vector<2x640xf32>
    %31 = tpu.iota {dimensions = array<i32: 1>} : vector<1x640xi32>
    %c64_i32 = arith.constant 64 : i32
    %32 = vector.broadcast %c64_i32 : i32 to vector<1x640xi32>
    %33 = arith.cmpi slt, %31, %32 : vector<1x640xi32>
    %c0_i32 = arith.constant 0 : i32
    %34 = arith.cmpi eq, %arg1, %c0_i32 : i32
    %35 = vector.broadcast %34 : i1 to vector<1x640xi1>
    %36 = arith.andi %33, %35 : vector<1x640xi1>
    %c576_i32 = arith.constant 576 : i32
    %37 = vector.broadcast %c576_i32 : i32 to vector<1x640xi32>
    %38 = arith.cmpi sge, %31, %37 : vector<1x640xi32>
    %c0_i32_7 = arith.constant 0 : i32
    %39 = arith.cmpi eq, %arg1, %c0_i32_7 : i32
    %40 = vector.broadcast %39 : i1 to vector<1x640xi1>
    %41 = arith.andi %38, %40 : vector<1x640xi1>
    %42 = arith.ori %36, %41 : vector<1x640xi1>
    %cst_8 = arith.constant 0.000000e+00 : f32
    %43 = vector.shape_cast %42 : vector<1x640xi1> to vector<1x640xi1>
    %44 = vector.broadcast %43 : vector<1x640xi1> to vector<2x640xi1>
    %45 = vector.broadcast %cst_8 : f32 to vector<2x640xf32>
    %46 = arith.select %44, %45, %30 : vector<2x640xi1>, vector<2x640xf32>
    %c0_9 = arith.constant 0 : index
    %c0_10 = arith.constant 0 : index
    %c0_11 = arith.constant 0 : index
    %47 = vector.load %arg6[%c0_9, %c0_10, %c0_11] : memref<3x2x2xf32, #tpu.memory_space<vmem>>, vector<1x2x2xf32>
    %48 = vector.shape_cast %47 : vector<1x2x2xf32> to vector<2x2xf32>
    %49 = vector.extract_strided_slice %46 {offsets = [0, 0], sizes = [2, 512], strides = [1, 1]} : vector<2x640xf32> to vector<2x512xf32>
    %50 = vector.extract_strided_slice %48 {offsets = [0, 0], sizes = [2, 1], strides = [1, 1]} : vector<2x2xf32> to vector<2x1xf32>
    %51 = vector.extract_strided_slice %49 {offsets = [0, 0], sizes = [1, 512], strides = [1, 1]} : vector<2x512xf32> to vector<1x512xf32>
    %52 = vector.broadcast %50 : vector<2x1xf32> to vector<2x512xf32>
    %53 = vector.broadcast %51 : vector<1x512xf32> to vector<2x512xf32>
    %54 = arith.mulf %52, %53 : vector<2x512xf32>
    %55 = vector.extract_strided_slice %48 {offsets = [0, 1], sizes = [2, 1], strides = [1, 1]} : vector<2x2xf32> to vector<2x1xf32>
    %56 = vector.extract_strided_slice %49 {offsets = [1, 0], sizes = [1, 512], strides = [1, 1]} : vector<2x512xf32> to vector<1x512xf32>
    %57 = vector.broadcast %55 : vector<2x1xf32> to vector<2x512xf32>
    %58 = vector.broadcast %56 : vector<1x512xf32> to vector<2x512xf32>
    %59 = arith.mulf %57, %58 : vector<2x512xf32>
    %60 = arith.addf %54, %59 : vector<2x512xf32>
    %c1 = arith.constant 1 : index
    %c0_12 = arith.constant 0 : index
    %c0_13 = arith.constant 0 : index
    %61 = vector.load %arg6[%c1, %c0_12, %c0_13] : memref<3x2x2xf32, #tpu.memory_space<vmem>>, vector<1x2x2xf32>
    %62 = vector.shape_cast %61 : vector<1x2x2xf32> to vector<2x2xf32>
    %63 = vector.extract_strided_slice %46 {offsets = [0, 64], sizes = [2, 512], strides = [1, 1]} : vector<2x640xf32> to vector<2x512xf32>
    %64 = vector.extract_strided_slice %62 {offsets = [0, 0], sizes = [2, 1], strides = [1, 1]} : vector<2x2xf32> to vector<2x1xf32>
    %65 = vector.extract_strided_slice %63 {offsets = [0, 0], sizes = [1, 512], strides = [1, 1]} : vector<2x512xf32> to vector<1x512xf32>
    %66 = vector.broadcast %64 : vector<2x1xf32> to vector<2x512xf32>
    %67 = vector.broadcast %65 : vector<1x512xf32> to vector<2x512xf32>
    %68 = arith.mulf %66, %67 : vector<2x512xf32>
    %69 = vector.extract_strided_slice %62 {offsets = [0, 1], sizes = [2, 1], strides = [1, 1]} : vector<2x2xf32> to vector<2x1xf32>
    %70 = vector.extract_strided_slice %63 {offsets = [1, 0], sizes = [1, 512], strides = [1, 1]} : vector<2x512xf32> to vector<1x512xf32>
    %71 = vector.broadcast %69 : vector<2x1xf32> to vector<2x512xf32>
    %72 = vector.broadcast %70 : vector<1x512xf32> to vector<2x512xf32>
    %73 = arith.mulf %71, %72 : vector<2x512xf32>
    %74 = arith.addf %68, %73 : vector<2x512xf32>
    %75 = arith.addf %60, %74 : vector<2x512xf32>
    %c2 = arith.constant 2 : index
    %c0_14 = arith.constant 0 : index
    %c0_15 = arith.constant 0 : index
    %76 = vector.load %arg6[%c2, %c0_14, %c0_15] : memref<3x2x2xf32, #tpu.memory_space<vmem>>, vector<1x2x2xf32>
    %77 = vector.shape_cast %76 : vector<1x2x2xf32> to vector<2x2xf32>
    %78 = vector.extract_strided_slice %46 {offsets = [0, 128], sizes = [2, 512], strides = [1, 1]} : vector<2x640xf32> to vector<2x512xf32>
    %79 = vector.extract_strided_slice %77 {offsets = [0, 0], sizes = [2, 1], strides = [1, 1]} : vector<2x2xf32> to vector<2x1xf32>
    %80 = vector.extract_strided_slice %78 {offsets = [0, 0], sizes = [1, 512], strides = [1, 1]} : vector<2x512xf32> to vector<1x512xf32>
    %81 = vector.broadcast %79 : vector<2x1xf32> to vector<2x512xf32>
    %82 = vector.broadcast %80 : vector<1x512xf32> to vector<2x512xf32>
    %83 = arith.mulf %81, %82 : vector<2x512xf32>
    %84 = vector.extract_strided_slice %77 {offsets = [0, 1], sizes = [2, 1], strides = [1, 1]} : vector<2x2xf32> to vector<2x1xf32>
    %85 = vector.extract_strided_slice %78 {offsets = [1, 0], sizes = [1, 512], strides = [1, 1]} : vector<2x512xf32> to vector<1x512xf32>
    %86 = vector.broadcast %84 : vector<2x1xf32> to vector<2x512xf32>
    %87 = vector.broadcast %85 : vector<1x512xf32> to vector<2x512xf32>
    %88 = arith.mulf %86, %87 : vector<2x512xf32>
    %89 = arith.addf %83, %88 : vector<2x512xf32>
    %90 = arith.addf %75, %89 : vector<2x512xf32>
    %c0_16 = arith.constant 0 : index
    %c0_17 = arith.constant 0 : index
    %91 = vector.load %arg7[%c0_16, %c0_17] : memref<2x1xf32, #tpu.memory_space<vmem>>, vector<2x1xf32>
    %92 = vector.broadcast %91 : vector<2x1xf32> to vector<2x512xf32>
    %93 = arith.addf %90, %92 : vector<2x512xf32>
    %cst_18 = arith.constant 0.000000e+00 : f32
    %94 = vector.broadcast %cst_18 : f32 to vector<2x8xf32>
    %c0_19 = arith.constant 0 : index
    %c0_20 = arith.constant 0 : index
    %95 = vector.load %arg19[%c0_19, %c0_20] : memref<2x528xf32, #tpu.memory_space<vmem>>, vector<2x8xf32>
    tpu.vector_store %arg19[%c0_19, %c0_20], %94 {strides = array<i32>} : memref<2x528xf32, #tpu.memory_space<vmem>>, vector<2x8xf32>,
    %c0_21 = arith.constant 0 : index
    %c520 = arith.constant 520 : index
    %96 = vector.load %arg19[%c0_21, %c520] : memref<2x528xf32, #tpu.memory_space<vmem>>, vector<2x8xf32>
    tpu.vector_store %arg19[%c0_21, %c520], %94 {strides = array<i32>} : memref<2x528xf32, #tpu.memory_space<vmem>>, vector<2x8xf32>,
    %c0_22 = arith.constant 0 : index
    %c8 = arith.constant 8 : index
    %97 = vector.load %arg19[%c0_22, %c8] : memref<2x528xf32, #tpu.memory_space<vmem>>, vector<2x512xf32>
    tpu.vector_store %arg19[%c0_22, %c8], %93 {strides = array<i32>} : memref<2x528xf32, #tpu.memory_space<vmem>>, vector<2x512xf32>,
    %c0_23 = arith.constant 0 : index
    %c0_24 = arith.constant 0 : index
    %98 = vector.load %arg19[%c0_23, %c0_24] : memref<2x528xf32, #tpu.memory_space<vmem>>, vector<2x512xf32>
    %c0_25 = arith.constant 0 : index
    %c0_26 = arith.constant 0 : index
    %99 = vector.load %arg3[%c0_25, %c0_26] : memref<4x512xf32, #tpu.memory_space<vmem>>, vector<1x512xf32>
    %100 = vector.broadcast %99 : vector<1x512xf32> to vector<2x512xf32>
    %101 = arith.mulf %98, %100 : vector<2x512xf32>
    %c0_27 = arith.constant 0 : index
    %c16 = arith.constant 16 : index
    %102 = vector.load %arg19[%c0_27, %c16] : memref<2x528xf32, #tpu.memory_space<vmem>>, vector<2x512xf32>
    %c1_28 = arith.constant 1 : index
    %c0_29 = arith.constant 0 : index
    %103 = vector.load %arg3[%c1_28, %c0_29] : memref<4x512xf32, #tpu.memory_space<vmem>>, vector<1x512xf32>
    %104 = vector.broadcast %103 : vector<1x512xf32> to vector<2x512xf32>
    %105 = arith.mulf %102, %104 : vector<2x512xf32>
    %c0_30 = arith.constant 0 : index
    %c0_31 = arith.constant 0 : index
    %c0_32 = arith.constant 0 : index
    %106 = vector.load %arg8[%c0_30, %c0_31, %c0_32] : memref<3x2x2xf32, #tpu.memory_space<vmem>>, vector<1x2x2xf32>
    %107 = vector.shape_cast %106 : vector<1x2x2xf32> to vector<2x2xf32>
    %108 = vector.extract_strided_slice %107 {offsets = [0, 0], sizes = [2, 1], strides = [1, 1]} : vector<2x2xf32> to vector<2x1xf32>
    %109 = vector.extract_strided_slice %101 {offsets = [0, 0], sizes = [1, 512], strides = [1, 1]} : vector<2x512xf32> to vector<1x512xf32>
    %110 = vector.broadcast %108 : vector<2x1xf32> to vector<2x512xf32>
    %111 = vector.broadcast %109 : vector<1x512xf32> to vector<2x512xf32>
    %112 = arith.mulf %110, %111 : vector<2x512xf32>
    %113 = vector.extract_strided_slice %107 {offsets = [0, 1], sizes = [2, 1], strides = [1, 1]} : vector<2x2xf32> to vector<2x1xf32>
    %114 = vector.extract_strided_slice %101 {offsets = [1, 0], sizes = [1, 512], strides = [1, 1]} : vector<2x512xf32> to vector<1x512xf32>
    %115 = vector.broadcast %113 : vector<2x1xf32> to vector<2x512xf32>
    %116 = vector.broadcast %114 : vector<1x512xf32> to vector<2x512xf32>
    %117 = arith.mulf %115, %116 : vector<2x512xf32>
    %118 = arith.addf %112, %117 : vector<2x512xf32>
    %c1_33 = arith.constant 1 : index
    %c0_34 = arith.constant 0 : index
    %c0_35 = arith.constant 0 : index
    %119 = vector.load %arg8[%c1_33, %c0_34, %c0_35] : memref<3x2x2xf32, #tpu.memory_space<vmem>>, vector<1x2x2xf32>
    %120 = vector.shape_cast %119 : vector<1x2x2xf32> to vector<2x2xf32>
    %121 = vector.extract_strided_slice %120 {offsets = [0, 0], sizes = [2, 1], strides = [1, 1]} : vector<2x2xf32> to vector<2x1xf32>
    %122 = vector.extract_strided_slice %93 {offsets = [0, 0], sizes = [1, 512], strides = [1, 1]} : vector<2x512xf32> to vector<1x512xf32>
    %123 = vector.broadcast %121 : vector<2x1xf32> to vector<2x512xf32>
    %124 = vector.broadcast %122 : vector<1x512xf32> to vector<2x512xf32>
    %125 = arith.mulf %123, %124 : vector<2x512xf32>
    %126 = vector.extract_strided_slice %120 {offsets = [0, 1], sizes = [2, 1], strides = [1, 1]} : vector<2x2xf32> to vector<2x1xf32>
    %127 = vector.extract_strided_slice %93 {offsets = [1, 0], sizes = [1, 512], strides = [1, 1]} : vector<2x512xf32> to vector<1x512xf32>
    %128 = vector.broadcast %126 : vector<2x1xf32> to vector<2x512xf32>
    %129 = vector.broadcast %127 : vector<1x512xf32> to vector<2x512xf32>
    %130 = arith.mulf %128, %129 : vector<2x512xf32>
    %131 = arith.addf %125, %130 : vector<2x512xf32>
    %132 = arith.addf %118, %131 : vector<2x512xf32>
    %c2_36 = arith.constant 2 : index
    %c0_37 = arith.constant 0 : index
    %c0_38 = arith.constant 0 : index
    %133 = vector.load %arg8[%c2_36, %c0_37, %c0_38] : memref<3x2x2xf32, #tpu.memory_space<vmem>>, vector<1x2x2xf32>
    %134 = vector.shape_cast %133 : vector<1x2x2xf32> to vector<2x2xf32>
    %135 = vector.extract_strided_slice %134 {offsets = [0, 0], sizes = [2, 1], strides = [1, 1]} : vector<2x2xf32> to vector<2x1xf32>
    %136 = vector.extract_strided_slice %105 {offsets = [0, 0], sizes = [1, 512], strides = [1, 1]} : vector<2x512xf32> to vector<1x512xf32>
    %137 = vector.broadcast %135 : vector<2x1xf32> to vector<2x512xf32>
    %138 = vector.broadcast %136 : vector<1x512xf32> to vector<2x512xf32>
    %139 = arith.mulf %137, %138 : vector<2x512xf32>
    %140 = vector.extract_strided_slice %134 {offsets = [0, 1], sizes = [2, 1], strides = [1, 1]} : vector<2x2xf32> to vector<2x1xf32>
    %141 = vector.extract_strided_slice %105 {offsets = [1, 0], sizes = [1, 512], strides = [1, 1]} : vector<2x512xf32> to vector<1x512xf32>
    %142 = vector.broadcast %140 : vector<2x1xf32> to vector<2x512xf32>
    %143 = vector.broadcast %141 : vector<1x512xf32> to vector<2x512xf32>
    %144 = arith.mulf %142, %143 : vector<2x512xf32>
    %145 = arith.addf %139, %144 : vector<2x512xf32>
    %146 = arith.addf %132, %145 : vector<2x512xf32>
    %c0_39 = arith.constant 0 : index
    %c0_40 = arith.constant 0 : index
    %147 = vector.load %arg9[%c0_39, %c0_40] : memref<2x1xf32, #tpu.memory_space<vmem>>, vector<2x1xf32>
    %148 = vector.broadcast %147 : vector<2x1xf32> to vector<2x512xf32>
    %149 = arith.addf %146, %148 : vector<2x512xf32>
    %c0_41 = arith.constant 0 : index
    %c8_42 = arith.constant 8 : index
    %150 = vector.load %arg19[%c0_41, %c8_42] : memref<2x528xf32, #tpu.memory_space<vmem>>, vector<2x512xf32>
    tpu.vector_store %arg19[%c0_41, %c8_42], %149 {strides = array<i32>} : memref<2x528xf32, #tpu.memory_space<vmem>>, vector<2x512xf32>,
    %c0_43 = arith.constant 0 : index
    %c7 = arith.constant 7 : index
    %151 = vector.load %arg19[%c0_43, %c7] : memref<2x528xf32, #tpu.memory_space<vmem>>, vector<2x512xf32>
    %c2_44 = arith.constant 2 : index
    %c0_45 = arith.constant 0 : index
    %152 = vector.load %arg3[%c2_44, %c0_45] : memref<4x512xf32, #tpu.memory_space<vmem>>, vector<1x512xf32>
    %153 = vector.broadcast %152 : vector<1x512xf32> to vector<2x512xf32>
    %154 = arith.mulf %151, %153 : vector<2x512xf32>
    %c0_46 = arith.constant 0 : index
    %c9 = arith.constant 9 : index
    %155 = vector.load %arg19[%c0_46, %c9] : memref<2x528xf32, #tpu.memory_space<vmem>>, vector<2x512xf32>
    %c3 = arith.constant 3 : index
    %c0_47 = arith.constant 0 : index
    %156 = vector.load %arg3[%c3, %c0_47] : memref<4x512xf32, #tpu.memory_space<vmem>>, vector<1x512xf32>
    %157 = vector.broadcast %156 : vector<1x512xf32> to vector<2x512xf32>
    %158 = arith.mulf %155, %157 : vector<2x512xf32>
    %c0_48 = arith.constant 0 : index
    %c0_49 = arith.constant 0 : index
    %c0_50 = arith.constant 0 : index
    %159 = vector.load %arg10[%c0_48, %c0_49, %c0_50] : memref<3x2x2xf32, #tpu.memory_space<vmem>>, vector<1x2x2xf32>
    %160 = vector.shape_cast %159 : vector<1x2x2xf32> to vector<2x2xf32>
    %161 = vector.extract_strided_slice %160 {offsets = [0, 0], sizes = [2, 1], strides = [1, 1]} : vector<2x2xf32> to vector<2x1xf32>
    %162 = vector.extract_strided_slice %154 {offsets = [0, 0], sizes = [1, 512], strides = [1, 1]} : vector<2x512xf32> to vector<1x512xf32>
    %163 = vector.broadcast %161 : vector<2x1xf32> to vector<2x512xf32>
    %164 = vector.broadcast %162 : vector<1x512xf32> to vector<2x512xf32>
    %165 = arith.mulf %163, %164 : vector<2x512xf32>
    %166 = vector.extract_strided_slice %160 {offsets = [0, 1], sizes = [2, 1], strides = [1, 1]} : vector<2x2xf32> to vector<2x1xf32>
    %167 = vector.extract_strided_slice %154 {offsets = [1, 0], sizes = [1, 512], strides = [1, 1]} : vector<2x512xf32> to vector<1x512xf32>
    %168 = vector.broadcast %166 : vector<2x1xf32> to vector<2x512xf32>
    %169 = vector.broadcast %167 : vector<1x512xf32> to vector<2x512xf32>
    %170 = arith.mulf %168, %169 : vector<2x512xf32>
    %171 = arith.addf %165, %170 : vector<2x512xf32>
    %c1_51 = arith.constant 1 : index
    %c0_52 = arith.constant 0 : index
    %c0_53 = arith.constant 0 : index
    %172 = vector.load %arg10[%c1_51, %c0_52, %c0_53] : memref<3x2x2xf32, #tpu.memory_space<vmem>>, vector<1x2x2xf32>
    %173 = vector.shape_cast %172 : vector<1x2x2xf32> to vector<2x2xf32>
    %174 = vector.extract_strided_slice %173 {offsets = [0, 0], sizes = [2, 1], strides = [1, 1]} : vector<2x2xf32> to vector<2x1xf32>
    %175 = vector.extract_strided_slice %149 {offsets = [0, 0], sizes = [1, 512], strides = [1, 1]} : vector<2x512xf32> to vector<1x512xf32>
    %176 = vector.broadcast %174 : vector<2x1xf32> to vector<2x512xf32>
    %177 = vector.broadcast %175 : vector<1x512xf32> to vector<2x512xf32>
    %178 = arith.mulf %176, %177 : vector<2x512xf32>
    %179 = vector.extract_strided_slice %173 {offsets = [0, 1], sizes = [2, 1], strides = [1, 1]} : vector<2x2xf32> to vector<2x1xf32>
    %180 = vector.extract_strided_slice %149 {offsets = [1, 0], sizes = [1, 512], strides = [1, 1]} : vector<2x512xf32> to vector<1x512xf32>
    %181 = vector.broadcast %179 : vector<2x1xf32> to vector<2x512xf32>
    %182 = vector.broadcast %180 : vector<1x512xf32> to vector<2x512xf32>
    %183 = arith.mulf %181, %182 : vector<2x512xf32>
    %184 = arith.addf %178, %183 : vector<2x512xf32>
    %185 = arith.addf %171, %184 : vector<2x512xf32>
    %c2_54 = arith.constant 2 : index
    %c0_55 = arith.constant 0 : index
    %c0_56 = arith.constant 0 : index
    %186 = vector.load %arg10[%c2_54, %c0_55, %c0_56] : memref<3x2x2xf32, #tpu.memory_space<vmem>>, vector<1x2x2xf32>
    %187 = vector.shape_cast %186 : vector<1x2x2xf32> to vector<2x2xf32>
    %188 = vector.extract_strided_slice %187 {offsets = [0, 0], sizes = [2, 1], strides = [1, 1]} : vector<2x2xf32> to vector<2x1xf32>
    %189 = vector.extract_strided_slice %158 {offsets = [0, 0], sizes = [1, 512], strides = [1, 1]} : vector<2x512xf32> to vector<1x512xf32>
    %190 = vector.broadcast %188 : vector<2x1xf32> to vector<2x512xf32>
    %191 = vector.broadcast %189 : vector<1x512xf32> to vector<2x512xf32>
    %192 = arith.mulf %190, %191 : vector<2x512xf32>
    %193 = vector.extract_strided_slice %187 {offsets = [0, 1], sizes = [2, 1], strides = [1, 1]} : vector<2x2xf32> to vector<2x1xf32>
    %194 = vector.extract_strided_slice %158 {offsets = [1, 0], sizes = [1, 512], strides = [1, 1]} : vector<2x512xf32> to vector<1x512xf32>
    %195 = vector.broadcast %193 : vector<2x1xf32> to vector<2x512xf32>
    %196 = vector.broadcast %194 : vector<1x512xf32> to vector<2x512xf32>
    %197 = arith.mulf %195, %196 : vector<2x512xf32>
    %198 = arith.addf %192, %197 : vector<2x512xf32>
    %199 = arith.addf %185, %198 : vector<2x512xf32>
    %c0_57 = arith.constant 0 : index
    %c0_58 = arith.constant 0 : index
    %200 = vector.load %arg11[%c0_57, %c0_58] : memref<2x1xf32, #tpu.memory_space<vmem>>, vector<2x1xf32>
    %201 = vector.broadcast %200 : vector<2x1xf32> to vector<2x512xf32>
    %202 = arith.addf %199, %201 : vector<2x512xf32>
    %cst_59 = arith.constant 0.000000e+00 : f32
    %203 = vector.broadcast %cst_59 : f32 to vector<2x512xf32>
    %204 = arith.maximumf %202, %203 : vector<2x512xf32>
    %c0_60 = arith.constant 0 : index
    %c0_61 = arith.constant 0 : index
    %205 = vector.load %arg12[%c0_60, %c0_61] : memref<8x2xf32, #tpu.memory_space<vmem>>, vector<8x2xf32>
    %206 = vector.extract_strided_slice %205 {offsets = [0, 0], sizes = [8, 1], strides = [1, 1]} : vector<8x2xf32> to vector<8x1xf32>
    %207 = vector.extract_strided_slice %204 {offsets = [0, 0], sizes = [1, 512], strides = [1, 1]} : vector<2x512xf32> to vector<1x512xf32>
    %208 = vector.broadcast %206 : vector<8x1xf32> to vector<8x512xf32>
    %209 = vector.broadcast %207 : vector<1x512xf32> to vector<8x512xf32>
    %210 = arith.mulf %208, %209 : vector<8x512xf32>
    %211 = vector.extract_strided_slice %205 {offsets = [0, 1], sizes = [8, 1], strides = [1, 1]} : vector<8x2xf32> to vector<8x1xf32>
    %212 = vector.extract_strided_slice %204 {offsets = [1, 0], sizes = [1, 512], strides = [1, 1]} : vector<2x512xf32> to vector<1x512xf32>
    %213 = vector.broadcast %211 : vector<8x1xf32> to vector<8x512xf32>
    %214 = vector.broadcast %212 : vector<1x512xf32> to vector<8x512xf32>
    %215 = arith.mulf %213, %214 : vector<8x512xf32>
    %216 = arith.addf %210, %215 : vector<8x512xf32>
    %c0_62 = arith.constant 0 : index
    %c0_63 = arith.constant 0 : index
    %217 = vector.load %arg13[%c0_62, %c0_63] : memref<8x1xf32, #tpu.memory_space<vmem>>, vector<8x1xf32>
    %218 = vector.broadcast %217 : vector<8x1xf32> to vector<8x512xf32>
    %219 = arith.addf %216, %218 : vector<8x512xf32>
    %cst_64 = arith.constant 0.000000e+00 : f32
    %220 = vector.broadcast %cst_64 : f32 to vector<8x512xf32>
    %221 = arith.maximumf %219, %220 : vector<8x512xf32>
    %222 = vector.extract_strided_slice %1 {offsets = [0, 64], sizes = [4, 512], strides = [1, 1]} : vector<4x640xf32> to vector<4x512xf32>
    %c0_65 = arith.constant 0 : index
    %c0_66 = arith.constant 0 : index
    %223 = vector.load %arg14[%c0_65, %c0_66] : memref<8x4xf32, #tpu.memory_space<vmem>>, vector<8x4xf32>
    %224 = vector.extract_strided_slice %223 {offsets = [0, 0], sizes = [8, 1], strides = [1, 1]} : vector<8x4xf32> to vector<8x1xf32>
    %225 = vector.extract_strided_slice %222 {offsets = [0, 0], sizes = [1, 512], strides = [1, 1]} : vector<4x512xf32> to vector<1x512xf32>
    %226 = vector.broadcast %224 : vector<8x1xf32> to vector<8x512xf32>
    %227 = vector.broadcast %225 : vector<1x512xf32> to vector<8x512xf32>
    %228 = arith.mulf %226, %227 : vector<8x512xf32>
    %229 = vector.extract_strided_slice %223 {offsets = [0, 1], sizes = [8, 1], strides = [1, 1]} : vector<8x4xf32> to vector<8x1xf32>
    %230 = vector.extract_strided_slice %222 {offsets = [1, 0], sizes = [1, 512], strides = [1, 1]} : vector<4x512xf32> to vector<1x512xf32>
    %231 = vector.broadcast %229 : vector<8x1xf32> to vector<8x512xf32>
    %232 = vector.broadcast %230 : vector<1x512xf32> to vector<8x512xf32>
    %233 = arith.mulf %231, %232 : vector<8x512xf32>
    %234 = arith.addf %228, %233 : vector<8x512xf32>
    %235 = vector.extract_strided_slice %223 {offsets = [0, 2], sizes = [8, 1], strides = [1, 1]} : vector<8x4xf32> to vector<8x1xf32>
    %236 = vector.extract_strided_slice %222 {offsets = [2, 0], sizes = [1, 512], strides = [1, 1]} : vector<4x512xf32> to vector<1x512xf32>
    %237 = vector.broadcast %235 : vector<8x1xf32> to vector<8x512xf32>
    %238 = vector.broadcast %236 : vector<1x512xf32> to vector<8x512xf32>
    %239 = arith.mulf %237, %238 : vector<8x512xf32>
    %240 = arith.addf %234, %239 : vector<8x512xf32>
    %241 = vector.extract_strided_slice %223 {offsets = [0, 3], sizes = [8, 1], strides = [1, 1]} : vector<8x4xf32> to vector<8x1xf32>
    %242 = vector.extract_strided_slice %222 {offsets = [3, 0], sizes = [1, 512], strides = [1, 1]} : vector<4x512xf32> to vector<1x512xf32>
    %243 = vector.broadcast %241 : vector<8x1xf32> to vector<8x512xf32>
    %244 = vector.broadcast %242 : vector<1x512xf32> to vector<8x512xf32>
    %245 = arith.mulf %243, %244 : vector<8x512xf32>
    %246 = arith.addf %240, %245 : vector<8x512xf32>
    %c0_67 = arith.constant 0 : index
    %c0_68 = arith.constant 0 : index
    %247 = vector.load %arg15[%c0_67, %c0_68] : memref<8x1xf32, #tpu.memory_space<vmem>>, vector<8x1xf32>
    %248 = vector.broadcast %247 : vector<8x1xf32> to vector<8x512xf32>
    %249 = arith.addf %246, %248 : vector<8x512xf32>
    %250 = arith.addf %221, %249 : vector<8x512xf32>
    %c0_69 = arith.constant 0 : index
    %c0_70 = arith.constant 0 : index
    %c0_71 = arith.constant 0 : index
    %251 = vector.load %arg16[%c0_69, %c0_70, %c0_71] : memref<1x8x512xf32, #tpu.memory_space<vmem>>, vector<1x8x512xf32>
    %252 = vector.shape_cast %251 : vector<1x8x512xf32> to vector<8x512xf32>
    %253 = vector.shape_cast %250 : vector<8x512xf32> to vector<1x8x512xf32>
    tpu.vector_store %arg16[%c0_69, %c0_70, %c0_71], %253 {strides = array<i32>} : memref<1x8x512xf32, #tpu.memory_space<vmem>>, vector<1x8x512xf32>,
    %c0_i32_72 = arith.constant 0 : i32
    %254 = arith.cmpi eq, %arg1, %c0_i32_72 : i32
    %255 = arith.extui %254 : i1 to i32
    %c0_i32_73 = arith.constant 0 : i32
    %256 = arith.cmpi ne, %255, %c0_i32_73 : i32
    scf.if %256 {
      %cst_88 = arith.constant 0.000000e+00 : f32
      %274 = vector.broadcast %cst_88 : f32 to vector<8x1xf32>
      %c0_89 = arith.constant 0 : index
      %c0_90 = arith.constant 0 : index
      %c0_91 = arith.constant 0 : index
      %275 = vector.load %arg17[%c0_89, %c0_90, %c0_91] : memref<1x8x1xf32, #tpu.memory_space<vmem>>, vector<1x8x1xf32>
      %276 = vector.shape_cast %275 : vector<1x8x1xf32> to vector<8x1xf32>
      %277 = vector.shape_cast %274 : vector<8x1xf32> to vector<1x8x1xf32>
      tpu.vector_store %arg17[%c0_89, %c0_90, %c0_91], %277 {strides = array<i32>} : memref<1x8x1xf32, #tpu.memory_space<vmem>>, vector<1x8x1xf32>,
      %cst_92 = arith.constant 0.000000e+00 : f32
      %278 = vector.broadcast %cst_92 : f32 to vector<8x1xf32>
      %c0_93 = arith.constant 0 : index
      %c0_94 = arith.constant 0 : index
      %c0_95 = arith.constant 0 : index
      %279 = vector.load %arg18[%c0_93, %c0_94, %c0_95] : memref<1x8x1xf32, #tpu.memory_space<vmem>>, vector<1x8x1xf32>
      %280 = vector.shape_cast %279 : vector<1x8x1xf32> to vector<8x1xf32>
      %281 = vector.shape_cast %278 : vector<8x1xf32> to vector<1x8x1xf32>
      tpu.vector_store %arg18[%c0_93, %c0_94, %c0_95], %281 {strides = array<i32>} : memref<1x8x1xf32, #tpu.memory_space<vmem>>, vector<1x8x1xf32>,
    } else {
    }
    %c0_74 = arith.constant 0 : index
    %c0_75 = arith.constant 0 : index
    %c0_76 = arith.constant 0 : index
    %257 = vector.load %arg17[%c0_74, %c0_75, %c0_76] : memref<1x8x1xf32, #tpu.memory_space<vmem>>, vector<1x8x1xf32>
    %258 = vector.shape_cast %257 : vector<1x8x1xf32> to vector<8x1xf32>
    %cst_77 = arith.constant dense<0.000000e+00> : vector<8xf32>
    %259 = vector.multi_reduction <add>, %250, %cst_77 [1] : vector<8x512xf32> to vector<8xf32>
    %260 = vector.shape_cast %259 : vector<8xf32> to vector<8x1xf32>
    %261 = arith.addf %258, %260 : vector<8x1xf32>
    %c0_78 = arith.constant 0 : index
    %c0_79 = arith.constant 0 : index
    %c0_80 = arith.constant 0 : index
    %262 = vector.load %arg17[%c0_78, %c0_79, %c0_80] : memref<1x8x1xf32, #tpu.memory_space<vmem>>, vector<1x8x1xf32>
    %263 = vector.shape_cast %262 : vector<1x8x1xf32> to vector<8x1xf32>
    %264 = vector.shape_cast %261 : vector<8x1xf32> to vector<1x8x1xf32>
    tpu.vector_store %arg17[%c0_78, %c0_79, %c0_80], %264 {strides = array<i32>} : memref<1x8x1xf32, #tpu.memory_space<vmem>>, vector<1x8x1xf32>,
    %c0_81 = arith.constant 0 : index
    %c0_82 = arith.constant 0 : index
    %c0_83 = arith.constant 0 : index
    %265 = vector.load %arg18[%c0_81, %c0_82, %c0_83] : memref<1x8x1xf32, #tpu.memory_space<vmem>>, vector<1x8x1xf32>
    %266 = vector.shape_cast %265 : vector<1x8x1xf32> to vector<8x1xf32>
    %267 = arith.mulf %250, %250 : vector<8x512xf32>
    %cst_84 = arith.constant dense<0.000000e+00> : vector<8xf32>
    %268 = vector.multi_reduction <add>, %267, %cst_84 [1] : vector<8x512xf32> to vector<8xf32>
    %269 = vector.shape_cast %268 : vector<8xf32> to vector<8x1xf32>
    %270 = arith.addf %266, %269 : vector<8x1xf32>
    %c0_85 = arith.constant 0 : index
    %c0_86 = arith.constant 0 : index
    %c0_87 = arith.constant 0 : index
    %271 = vector.load %arg18[%c0_85, %c0_86, %c0_87] : memref<1x8x1xf32, #tpu.memory_space<vmem>>, vector<1x8x1xf32>
    %272 = vector.shape_cast %271 : vector<1x8x1xf32> to vector<8x1xf32>
    %273 = vector.shape_cast %270 : vector<8x1xf32> to vector<1x8x1xf32>
    tpu.vector_store %arg18[%c0_85, %c0_86, %c0_87], %273 {strides = array<i32>} : memref<1x8x1xf32, #tpu.memory_space<vmem>>, vector<1x8x1xf32>,
    return
  }
  func.func @transform_0(%arg0: i32, %arg1: i32) -> (i32, i32, i32, i32) {
    %c0_i32 = arith.constant 0 : i32
    %c0_i32_0 = arith.constant 0 : i32
    %c0_i32_1 = arith.constant 0 : i32
    return %arg0, %arg1, %c0_i32, %c0_i32_0 : i32, i32, i32, i32
  }
  func.func @transform_1(%arg0: i32, %arg1: i32) -> (i32, i32) {
    %c0_i32 = arith.constant 0 : i32
    %c0_i32_0 = arith.constant 0 : i32
    %c0_i32_1 = arith.constant 0 : i32
    return %c0_i32, %c0_i32_0 : i32, i32
  }
  func.func @transform_2(%arg0: i32, %arg1: i32) -> (i32, i32) {
    %c0_i32 = arith.constant 0 : i32
    %c0_i32_0 = arith.constant 0 : i32
    %c0_i32_1 = arith.constant 0 : i32
    return %c0_i32, %c0_i32_0 : i32, i32
  }
  func.func @transform_3(%arg0: i32, %arg1: i32) -> (i32, i32) {
    %c0_i32 = arith.constant 0 : i32
    %c0_i32_0 = arith.constant 0 : i32
    %c0_i32_1 = arith.constant 0 : i32
    return %c0_i32, %c0_i32_0 : i32, i32
  }
  func.func @transform_4(%arg0: i32, %arg1: i32) -> (i32, i32, i32) {
    %c0_i32 = arith.constant 0 : i32
    %c0_i32_0 = arith.constant 0 : i32
    %c0_i32_1 = arith.constant 0 : i32
    %c0_i32_2 = arith.constant 0 : i32
    return %c0_i32, %c0_i32_0, %c0_i32_1 : i32, i32, i32
  }
  func.func @transform_5(%arg0: i32, %arg1: i32) -> (i32, i32) {
    %c0_i32 = arith.constant 0 : i32
    %c0_i32_0 = arith.constant 0 : i32
    %c0_i32_1 = arith.constant 0 : i32
    return %c0_i32, %c0_i32_0 : i32, i32
  }
  func.func @transform_6(%arg0: i32, %arg1: i32) -> (i32, i32, i32) {
    %c0_i32 = arith.constant 0 : i32
    %c0_i32_0 = arith.constant 0 : i32
    %c0_i32_1 = arith.constant 0 : i32
    %c0_i32_2 = arith.constant 0 : i32
    return %c0_i32, %c0_i32_0, %c0_i32_1 : i32, i32, i32
  }
  func.func @transform_7(%arg0: i32, %arg1: i32) -> (i32, i32) {
    %c0_i32 = arith.constant 0 : i32
    %c0_i32_0 = arith.constant 0 : i32
    %c0_i32_1 = arith.constant 0 : i32
    return %c0_i32, %c0_i32_0 : i32, i32
  }
  func.func @transform_8(%arg0: i32, %arg1: i32) -> (i32, i32, i32) {
    %c0_i32 = arith.constant 0 : i32
    %c0_i32_0 = arith.constant 0 : i32
    %c0_i32_1 = arith.constant 0 : i32
    %c0_i32_2 = arith.constant 0 : i32
    return %c0_i32, %c0_i32_0, %c0_i32_1 : i32, i32, i32
  }
  func.func @transform_9(%arg0: i32, %arg1: i32) -> (i32, i32) {
    %c0_i32 = arith.constant 0 : i32
    %c0_i32_0 = arith.constant 0 : i32
    %c0_i32_1 = arith.constant 0 : i32
    return %c0_i32, %c0_i32_0 : i32, i32
  }
  func.func @transform_10(%arg0: i32, %arg1: i32) -> (i32, i32) {
    %c0_i32 = arith.constant 0 : i32
    %c0_i32_0 = arith.constant 0 : i32
    %c0_i32_1 = arith.constant 0 : i32
    return %c0_i32, %c0_i32_0 : i32, i32
  }
  func.func @transform_11(%arg0: i32, %arg1: i32) -> (i32, i32) {
    %c0_i32 = arith.constant 0 : i32
    %c0_i32_0 = arith.constant 0 : i32
    %c0_i32_1 = arith.constant 0 : i32
    return %c0_i32, %c0_i32_0 : i32, i32
  }
  func.func @transform_12(%arg0: i32, %arg1: i32) -> (i32, i32) {
    %c0_i32 = arith.constant 0 : i32
    %c0_i32_0 = arith.constant 0 : i32
    %c0_i32_1 = arith.constant 0 : i32
    return %c0_i32, %c0_i32_0 : i32, i32
  }
  func.func @transform_13(%arg0: i32, %arg1: i32) -> (i32, i32) {
    %c0_i32 = arith.constant 0 : i32
    %c0_i32_0 = arith.constant 0 : i32
    %c0_i32_1 = arith.constant 0 : i32
    return %c0_i32, %c0_i32_0 : i32, i32
  }
  func.func @transform_14(%arg0: i32, %arg1: i32) -> (i32, i32, i32) {
    %c0_i32 = arith.constant 0 : i32
    %c0_i32_0 = arith.constant 0 : i32
    return %arg0, %c0_i32, %arg1 : i32, i32, i32
  }
  func.func @transform_15(%arg0: i32, %arg1: i32) -> (i32, i32, i32) {
    %c0_i32 = arith.constant 0 : i32
    %c0_i32_0 = arith.constant 0 : i32
    %c0_i32_1 = arith.constant 0 : i32
    return %arg0, %c0_i32, %c0_i32_0 : i32, i32, i32
  }
  func.func @transform_16(%arg0: i32, %arg1: i32) -> (i32, i32, i32) {
    %c0_i32 = arith.constant 0 : i32
    %c0_i32_0 = arith.constant 0 : i32
    %c0_i32_1 = arith.constant 0 : i32
    return %arg0, %c0_i32, %c0_i32_0 : i32, i32, i32
  }
}

module attributes {stable_mosaic.version = 11 : i64} {
  func.func @_gn_apply_merge_kernel(%arg0: i32, %arg1: i32, %arg2: memref<1x8x512xf32, #tpu.memory_space<vmem>>, %arg3: memref<1x8x1xf32, #tpu.memory_space<vmem>>, %arg4: memref<1x8x1xf32, #tpu.memory_space<vmem>>, %arg5: memref<1x8xf32, #tpu.memory_space<vmem>>, %arg6: memref<1x1xf32, #tpu.memory_space<vmem>>, %arg7: memref<1x8x512xf32, #tpu.memory_space<vmem>>, %arg8: memref<1x1x512xf32, #tpu.memory_space<vmem>>) attributes {dimension_semantics = [#tpu.dimension_semantics<parallel>, #tpu.dimension_semantics<parallel>], iteration_bounds = array<i64: 2, 1>, scalar_prefetch = 0 : i64, scratch_operands = 0 : i64, tpu.core_type = #tpu.core_type<tc>, window_params = [{transform_indices = @transform_0, window_bounds = array<i64: 1, 8, 512>}, {transform_indices = @transform_1, window_bounds = array<i64: 1, 8, 1>}, {transform_indices = @transform_2, window_bounds = array<i64: 1, 8, 1>}, {pipeline_mode = #tpu.pipeline_mode<synchronous>, transform_indices = @transform_3, window_bounds = array<i64: 1, 8>}, {pipeline_mode = #tpu.pipeline_mode<synchronous>, transform_indices = @transform_4, window_bounds = array<i64: 1, 1>}, {transform_indices = @transform_5, window_bounds = array<i64: 1, 8, 512>}, {transform_indices = @transform_6, window_bounds = array<i64: 1, 1, 512>}]} {
    %c0 = arith.constant 0 : index
    %c0_0 = arith.constant 0 : index
    %c0_1 = arith.constant 0 : index
    %0 = vector.load %arg2[%c0, %c0_0, %c0_1] : memref<1x8x512xf32, #tpu.memory_space<vmem>>, vector<1x8x512xf32>
    %1 = vector.shape_cast %0 : vector<1x8x512xf32> to vector<8x512xf32>
    %c0_2 = arith.constant 0 : index
    %c0_3 = arith.constant 0 : index
    %c0_4 = arith.constant 0 : index
    %2 = vector.load %arg3[%c0_2, %c0_3, %c0_4] : memref<1x8x1xf32, #tpu.memory_space<vmem>>, vector<1x8x1xf32>
    %3 = vector.shape_cast %2 : vector<1x8x1xf32> to vector<8x1xf32>
    %4 = vector.broadcast %3 : vector<8x1xf32> to vector<8x512xf32>
    %5 = arith.mulf %1, %4 : vector<8x512xf32>
    %c0_5 = arith.constant 0 : index
    %c0_6 = arith.constant 0 : index
    %c0_7 = arith.constant 0 : index
    %6 = vector.load %arg4[%c0_5, %c0_6, %c0_7] : memref<1x8x1xf32, #tpu.memory_space<vmem>>, vector<1x8x1xf32>
    %7 = vector.shape_cast %6 : vector<1x8x1xf32> to vector<8x1xf32>
    %8 = vector.broadcast %7 : vector<8x1xf32> to vector<8x512xf32>
    %9 = arith.addf %5, %8 : vector<8x512xf32>
    %cst = arith.constant 0.000000e+00 : f32
    %10 = vector.broadcast %cst : f32 to vector<8x512xf32>
    %11 = arith.maximumf %9, %10 : vector<8x512xf32>
    %c0_8 = arith.constant 0 : index
    %c0_9 = arith.constant 0 : index
    %c0_10 = arith.constant 0 : index
    %12 = vector.load %arg7[%c0_8, %c0_9, %c0_10] : memref<1x8x512xf32, #tpu.memory_space<vmem>>, vector<1x8x512xf32>
    %13 = vector.shape_cast %12 : vector<1x8x512xf32> to vector<8x512xf32>
    %14 = vector.shape_cast %11 : vector<8x512xf32> to vector<1x8x512xf32>
    tpu.vector_store %arg7[%c0_8, %c0_9, %c0_10], %14 {strides = array<i32>} : memref<1x8x512xf32, #tpu.memory_space<vmem>>, vector<1x8x512xf32>,
    %c0_11 = arith.constant 0 : index
    %c0_12 = arith.constant 0 : index
    %15 = vector.load %arg5[%c0_11, %c0_12] : memref<1x8xf32, #tpu.memory_space<vmem>>, vector<1x8xf32>
    %16 = vector.extract_strided_slice %15 {offsets = [0, 0], sizes = [1, 1], strides = [1, 1]} : vector<1x8xf32> to vector<1x1xf32>
    %17 = vector.extract_strided_slice %11 {offsets = [0, 0], sizes = [1, 512], strides = [1, 1]} : vector<8x512xf32> to vector<1x512xf32>
    %18 = vector.broadcast %16 : vector<1x1xf32> to vector<1x512xf32>
    %19 = arith.mulf %18, %17 : vector<1x512xf32>
    %20 = vector.extract_strided_slice %15 {offsets = [0, 1], sizes = [1, 1], strides = [1, 1]} : vector<1x8xf32> to vector<1x1xf32>
    %21 = vector.extract_strided_slice %11 {offsets = [1, 0], sizes = [1, 512], strides = [1, 1]} : vector<8x512xf32> to vector<1x512xf32>
    %22 = vector.broadcast %20 : vector<1x1xf32> to vector<1x512xf32>
    %23 = arith.mulf %22, %21 : vector<1x512xf32>
    %24 = arith.addf %19, %23 : vector<1x512xf32>
    %25 = vector.extract_strided_slice %15 {offsets = [0, 2], sizes = [1, 1], strides = [1, 1]} : vector<1x8xf32> to vector<1x1xf32>
    %26 = vector.extract_strided_slice %11 {offsets = [2, 0], sizes = [1, 512], strides = [1, 1]} : vector<8x512xf32> to vector<1x512xf32>
    %27 = vector.broadcast %25 : vector<1x1xf32> to vector<1x512xf32>
    %28 = arith.mulf %27, %26 : vector<1x512xf32>
    %29 = arith.addf %24, %28 : vector<1x512xf32>
    %30 = vector.extract_strided_slice %15 {offsets = [0, 3], sizes = [1, 1], strides = [1, 1]} : vector<1x8xf32> to vector<1x1xf32>
    %31 = vector.extract_strided_slice %11 {offsets = [3, 0], sizes = [1, 512], strides = [1, 1]} : vector<8x512xf32> to vector<1x512xf32>
    %32 = vector.broadcast %30 : vector<1x1xf32> to vector<1x512xf32>
    %33 = arith.mulf %32, %31 : vector<1x512xf32>
    %34 = arith.addf %29, %33 : vector<1x512xf32>
    %35 = vector.extract_strided_slice %15 {offsets = [0, 4], sizes = [1, 1], strides = [1, 1]} : vector<1x8xf32> to vector<1x1xf32>
    %36 = vector.extract_strided_slice %11 {offsets = [4, 0], sizes = [1, 512], strides = [1, 1]} : vector<8x512xf32> to vector<1x512xf32>
    %37 = vector.broadcast %35 : vector<1x1xf32> to vector<1x512xf32>
    %38 = arith.mulf %37, %36 : vector<1x512xf32>
    %39 = arith.addf %34, %38 : vector<1x512xf32>
    %40 = vector.extract_strided_slice %15 {offsets = [0, 5], sizes = [1, 1], strides = [1, 1]} : vector<1x8xf32> to vector<1x1xf32>
    %41 = vector.extract_strided_slice %11 {offsets = [5, 0], sizes = [1, 512], strides = [1, 1]} : vector<8x512xf32> to vector<1x512xf32>
    %42 = vector.broadcast %40 : vector<1x1xf32> to vector<1x512xf32>
    %43 = arith.mulf %42, %41 : vector<1x512xf32>
    %44 = arith.addf %39, %43 : vector<1x512xf32>
    %45 = vector.extract_strided_slice %15 {offsets = [0, 6], sizes = [1, 1], strides = [1, 1]} : vector<1x8xf32> to vector<1x1xf32>
    %46 = vector.extract_strided_slice %11 {offsets = [6, 0], sizes = [1, 512], strides = [1, 1]} : vector<8x512xf32> to vector<1x512xf32>
    %47 = vector.broadcast %45 : vector<1x1xf32> to vector<1x512xf32>
    %48 = arith.mulf %47, %46 : vector<1x512xf32>
    %49 = arith.addf %44, %48 : vector<1x512xf32>
    %50 = vector.extract_strided_slice %15 {offsets = [0, 7], sizes = [1, 1], strides = [1, 1]} : vector<1x8xf32> to vector<1x1xf32>
    %51 = vector.extract_strided_slice %11 {offsets = [7, 0], sizes = [1, 512], strides = [1, 1]} : vector<8x512xf32> to vector<1x512xf32>
    %52 = vector.broadcast %50 : vector<1x1xf32> to vector<1x512xf32>
    %53 = arith.mulf %52, %51 : vector<1x512xf32>
    %54 = arith.addf %49, %53 : vector<1x512xf32>
    %c0_13 = arith.constant 0 : index
    %c0_14 = arith.constant 0 : index
    %55 = vector.load %arg6[%c0_13, %c0_14] : memref<1x1xf32, #tpu.memory_space<vmem>>, vector<1x1xf32>
    %56 = vector.broadcast %55 : vector<1x1xf32> to vector<1x512xf32>
    %57 = arith.addf %54, %56 : vector<1x512xf32>
    %c0_15 = arith.constant 0 : index
    %c0_16 = arith.constant 0 : index
    %c0_17 = arith.constant 0 : index
    %58 = vector.load %arg8[%c0_15, %c0_16, %c0_17] : memref<1x1x512xf32, #tpu.memory_space<vmem>>, vector<1x1x512xf32>
    %59 = vector.shape_cast %58 : vector<1x1x512xf32> to vector<1x512xf32>
    %60 = vector.shape_cast %57 : vector<1x512xf32> to vector<1x1x512xf32>
    tpu.vector_store %arg8[%c0_15, %c0_16, %c0_17], %60 {strides = array<i32>} : memref<1x1x512xf32, #tpu.memory_space<vmem>>, vector<1x1x512xf32>,
    return
  }
  func.func @transform_0(%arg0: i32, %arg1: i32) -> (i32, i32, i32) {
    %c0_i32 = arith.constant 0 : i32
    %c0_i32_0 = arith.constant 0 : i32
    return %arg0, %c0_i32, %arg1 : i32, i32, i32
  }
  func.func @transform_1(%arg0: i32, %arg1: i32) -> (i32, i32, i32) {
    %c0_i32 = arith.constant 0 : i32
    %c0_i32_0 = arith.constant 0 : i32
    %c0_i32_1 = arith.constant 0 : i32
    return %arg0, %c0_i32, %c0_i32_0 : i32, i32, i32
  }
  func.func @transform_2(%arg0: i32, %arg1: i32) -> (i32, i32, i32) {
    %c0_i32 = arith.constant 0 : i32
    %c0_i32_0 = arith.constant 0 : i32
    %c0_i32_1 = arith.constant 0 : i32
    return %arg0, %c0_i32, %c0_i32_0 : i32, i32, i32
  }
  func.func @transform_3(%arg0: i32, %arg1: i32) -> (i32, i32) {
    %c0_i32 = arith.constant 0 : i32
    %c0_i32_0 = arith.constant 0 : i32
    %c0_i32_1 = arith.constant 0 : i32
    return %c0_i32, %c0_i32_0 : i32, i32
  }
  func.func @transform_4(%arg0: i32, %arg1: i32) -> (i32, i32) {
    %c0_i32 = arith.constant 0 : i32
    %c0_i32_0 = arith.constant 0 : i32
    %c0_i32_1 = arith.constant 0 : i32
    return %c0_i32, %c0_i32_0 : i32, i32
  }
  func.func @transform_5(%arg0: i32, %arg1: i32) -> (i32, i32, i32) {
    %c0_i32 = arith.constant 0 : i32
    %c0_i32_0 = arith.constant 0 : i32
    return %arg0, %c0_i32, %arg1 : i32, i32, i32
  }
  func.func @transform_6(%arg0: i32, %arg1: i32) -> (i32, i32, i32) {
    %c0_i32 = arith.constant 0 : i32
    %c0_i32_0 = arith.constant 0 : i32
    return %arg0, %c0_i32, %arg1 : i32, i32, i32
  }
}

</mosaic_0001>

<bundles_post_ra>
// kernel: conv_bias2_forward.3
= control target key start
LH: loop header
LB: loop body
LE: loop exit
PB: predicated region body
PF: predicated region fallthrough
CT: control target
= control target key end

     0   :  { %s924_s23 = smov 0   ;;  %s926_s24 = smov 0   ;;  %s1040_s0 = inlined_call_operand.vmem [shape: f32[2,8,512], index: 0, kind: input, shape index: {}]   ;;  %s1041_s1 = inlined_call_operand.vmem [shape: f32[2,8,1], index: 1, kind: input, shape index: {}]   ;;  %s1042_s2 = inlined_call_operand.vmem [shape: f32[2,8,1], index: 2, kind: input, shape index: {}]   ;;  %s1043_s3 = inlined_call_operand.vmem [shape: f32[1,8], index: 3, kind: input, shape index: {}]   ;;  %s1044_s4 = inlined_call_operand.<no memory space> [shape: f32[1,1], index: 4, kind: input, shape index: {}]   ;;  %s1045_s5 = inlined_call_operand.vmem [shape: f32[2,8,512], index: 5, kind: output, shape index: {0}]   ;;  %s1046_s6 = inlined_call_operand.vmem [shape: f32[2,1,512], index: 6, kind: output, shape index: {1}]  }
   0x1   :  { %v12_v0 = vstv %s1044_s4  ;;  %s928_s25 = smov 0  }
   0x2   :  { %13 = vst [vmem:[#allocation2] sm:$0x1] %v12_v0 }
   0x3 LB: > { %s31_s4 = sadd.s32 1, %s871_s24  ;;  %p798_p0 = scmp.ge.s32.totalorder %s875_s25, 1  ;;  %s875_s25 = sphi %s928_s25, %s19_s25   ;;  %s871_s24 = sphi %s926_s24, %s1048_s24   ;;  %s867_s23 = sphi %s924_s23, %s1047_s23  }
   0x4   : > { %p33_p1 = scmp.ge.s32.totalorder %s31_s4, 2  ;;  %p258_p2 = scmp.lt.s32.totalorder %s875_s25, 3 }
   0x6   : > { %s1050_s4 = smov (%p33_p1, %s31_s4), 0  ;;  %p259_p3 = pnand %p798_p0, %p258_p2 }
   0x7   : > { %v381_v1 = vld [vmem:[%s1043_s3] sm:$0x1] (!%p259_p3)  ;;  %p313_p4 = scmp.lt.s32.totalorder (!%p259_p3), %s867_s23, 1  ;;  %v877_v2 = vmov (!%p259_p3), 1   ;;  %v878_v3 = vmov (!%p259_p3), 0   ;;  %v879_v6 = vmov (!%p259_p3), 3   ;;  %v387_v14 = vlaneseq (!%p259_p3) }
   0x8   : > { %262 = sbr.rel (%p259_p3) target bundleno = 192 (0xc0), region = 40  ;;  %843 = vset.pattern.permute.xlu1 (!%p259_p3), %v877_v2  ;;  %845 = vset.pattern.permute.xlu0 (!%p259_p3), %v878_v3  ;;  %v880_v7 = vmov (!%p259_p3), 2   ;;  %v881_v8 = vmov (!%p259_p3), 4   ;;  %v882_v9 = vmov (!%p259_p3), 5   ;;  %v883_v10 = vmov (!%p259_p3), 6  }
   0x9   : > { %396 = vperm.xlu1 (!%p259_p3), %843, %v381_v1   ;;  %v591_v11 = vld [vmem:[#allocation2] sm:$0x1] (!%p259_p3)  ;;  %v884_v12 = vmov (!%p259_p3), 7   ;;  %v959_v19 = vshrl.u32 (!%p259_p3), %v387_v14, 7  ;;  %v885_v34 = vmov (!%p259_p3), 1966171168  }
   0xa   : > { %v968_v35 = vunpack.c.l.s4 (!%p259_p3), %v885_v34  ;;  %vm636_vm0 = vcmp.lt.s32.totalorder (!%p259_p3), %v387_v14, 512 }
   0xb   : > { %v962_v26 = vsub.s32 (!%p259_p3), 0, %v959_v19 }
   0xc   : > { %v613_v50 = vunpack.c.0.s8 (!%p259_p3), %v968_v35 }
   0xd   : > { %844 = vset.pattern.permute.xlu1 (!%p259_p3), %v878_v3 }
   0xe   : > { %384 = vperm.xlu1 (!%p259_p3), %844, %v381_v1  }
   0xf   : > { %s1052_s23 = smov (!%p313_p4, %s867_s23), 1 }
  0x10   : > { %s801_s28 = sshll.u32 %s1052_s23, 3  ;;  %s808_s11 = sshll.u32 %s1052_s23, 5 }
  0x11   : > { %s325_s7 = scalar_lea.vmem %s1041_s1, %s801_s28  ;;  %s329_s10 = scalar_lea.vmem %s1042_s2, %s801_s28 }
  0x12   : > { %v353_v4 = vld [vmem:[%s325_s7] sm:$0xff]  ;;  %847 = vset.pattern.permute.xlu1 %v879_v6  ;;  %s320_s14 = scalar_lea.vmem %s1040_s0, %s808_s11  ;;  %s338_s17 = scalar_lea.vmem %s1045_s5, %s808_s11 }
  0x13   : > { %356 = vperm.xlu0 %845, %v353_v4   ;;  %v363_v5 = vld [vmem:[%s329_s10] sm:$0xff]  ;;  %452 = vperm.xlu1 %847, %v381_v1   ;;  %v350_v16 = vld [vmem:[%s320_s14 + $0x8] sm:$0xff]  ;;  %v351_v17 = vld [vmem:[%s320_s14 + $0x10] sm:$0xff]  ;;  %s805_s18 = sshll.u32 %s1052_s23, 2 }
  0x14   : > { %v349_v15 = vld [vmem:[%s320_s14] sm:$0xff]  ;;  %v352_v18 = vld [vmem:[%s320_s14 + $0x18] sm:$0xff]  ;;  %s347_s21 = scalar_lea.vmem %s1046_s6, %s805_s18 }
  0x17   : > { %366 = vperm.xlu0 %845, %v363_v5   ;;  %848 = vset.pattern.permute.xlu1 %v881_v8 }
  0x18   : > { %480 = vperm.xlu1 %848, %v381_v1  }
  0x1b   : > { %846 = vset.pattern.permute.xlu0 %v880_v7 }
  0x1c   : > { %424 = vperm.xlu0 %846, %v381_v1   ;;  %850 = vset.pattern.permute.xlu1 %v883_v10 }
  0x1d   : > { %536 = vperm.xlu1 %850, %v381_v1  }
  0x20   : > { %849 = vset.pattern.permute.xlu0 %v882_v9 }
  0x21   : > { %508 = vperm.xlu0 %849, %v381_v1   ;;  %851 = vset.pattern.permute.xlu1 %v884_v12 }
  0x22   : > { %564 = vperm.xlu1 %851, %v381_v1  }
  0x25   : > { %852 = vset.pattern.permute.xlu0 %v878_v3 }
  0x26   : > { %594 = vperm.xlu0 %852, %v591_v11  }
  0x88   : > { %v397_v13 = vpop.permute.xlu1 %396 }
  0x89   : > { %v402_v46 = vrot.slane %v397_v13, %v962_v26 }
  0x8d   : > { %v385_v20 = vpop.permute.xlu1 %384 }
  0x8e   : > { %v390_v40 = vrot.slane %v385_v20, %v962_v26 }
  0x92   : > { %v357_v21 = vpop.permute.xlu0 %356  ;;  %v453_v32 = vpop.permute.xlu1 %452 }
  0x93   : > { %v359_v22 = vmul.f32 %v357_v21, %v349_v15  ;;  %v360_v23 = vmul.f32 %v357_v21, %v350_v16  ;;  %v361_v24 = vmul.f32 %v357_v21, %v351_v17  ;;  %v362_v25 = vmul.f32 %v357_v21, %v352_v18 }
  0x94   : > { %v458_v33 = vrot.slane %v453_v32, %v962_v26 }
  0x96   : > { %v367_v27 = vpop.permute.xlu0 %366 }
  0x97   : > { %v369_v28 = vadd.f32 %v367_v27, %v359_v22  ;;  %v370_v29 = vadd.f32 %v367_v27, %v360_v23  ;;  %v371_v30 = vadd.f32 %v367_v27, %v361_v24  ;;  %v372_v31 = vadd.f32 %v367_v27, %v362_v25  ;;  %v481_v49 = vpop.permute.xlu1 %480 }
  0x98   : > { %v486_v62 = vrot.slane %v481_v49, %v962_v26 }
  0x99   : > { %v970_v36 = vmax.f32 %v369_v28, 0.0  ;;  %v972_v37 = vmax.f32 %v370_v29, 0.0  ;;  %v974_v38 = vmax.f32 %v371_v30, 0.0  ;;  %v976_v39 = vmax.f32 %v372_v31, 0.0 }
  0x9b   : > { %377 = vst [vmem:[%s338_s17] sm:$0xff] %v970_v36  ;;  %378 = vst [vmem:[%s338_s17 + $0x8] sm:$0xff] %v972_v37  ;;  %v459_v41 = vmul.f32 %v458_v33, %v970_v36  ;;  %v460_v42 = vmul.f32 %v458_v33, %v972_v37  ;;  %v461_v43 = vmul.f32 %v458_v33, %v974_v38  ;;  %v425_v45 = vpop.permute.xlu0 %424 }
  0x9c   : > { %379 = vst [vmem:[%s338_s17 + $0x10] sm:$0xff] %v974_v38  ;;  %380 = vst [vmem:[%s338_s17 + $0x18] sm:$0xff] %v976_v39  ;;  %v462_v44 = vmul.f32 %v458_v33, %v976_v39  ;;  %v391_v47 = vmul.f32 %v390_v40, %v970_v36  ;;  %v392_v48 = vmul.f32 %v390_v40, %v972_v37  ;;  %v537_v8 = vpop.permute.xlu1 %536 }
  0x9d   : > { %v467_v51 = vrot.slane %v459_v41, 3  ;;  %v468_v52 = vrot.slane %v460_v42, 3  ;;  %v393_v53 = vmul.f32 %v390_v40, %v974_v38  ;;  %v394_v54 = vmul.f32 %v390_v40, %v976_v39 }
  0x9e   : > { %v403_v55 = vmul.f32 %v402_v46, %v970_v36  ;;  %v404_v56 = vmul.f32 %v402_v46, %v972_v37  ;;  %v405_v57 = vmul.f32 %v402_v46, %v974_v38  ;;  %v406_v58 = vmul.f32 %v402_v46, %v976_v39 }
  0x9f   : > { %v469_v59 = vrot.slane %v461_v43, 3  ;;  %v470_v60 = vrot.slane %v462_v44, 3  ;;  %v430_v61 = vrot.slane %v425_v45, %v962_v26  ;;  %v487_v18 = vmul.f32 %v486_v62, %v970_v36 }
  0xa0   : > { %v411_v63 = vrot.slane %v403_v55, 1  ;;  %v412_v0 = vrot.slane %v404_v56, 1  ;;  %v413_v1 = vrot.slane %v405_v57, 1  ;;  %v414_v2 = vrot.slane %v406_v58, 1  ;;  %v509_v7 = vpop.permute.xlu0 %508 }
  0xa1   : > { %v431_v3 = vmul.f32 %v430_v61, %v970_v36  ;;  %v432_v4 = vmul.f32 %v430_v61, %v972_v37  ;;  %v433_v5 = vmul.f32 %v430_v61, %v974_v38  ;;  %v434_v6 = vmul.f32 %v430_v61, %v976_v39  ;;  %v565_v33 = vpop.permute.xlu1 %564 }
  0xa2   : > { %v419_v9 = vadd.f32 %v411_v63, %v391_v47  ;;  %v420_v10 = vadd.f32 %v412_v0, %v392_v48  ;;  %v421_v11 = vadd.f32 %v413_v1, %v393_v53  ;;  %v422_v12 = vadd.f32 %v414_v2, %v394_v54 }
  0xa3   : > { %v439_v13 = vrot.slane %v431_v3, 2  ;;  %v440_v15 = vrot.slane %v432_v4, 2  ;;  %v441_v16 = vrot.slane %v433_v5, 2  ;;  %v442_v17 = vrot.slane %v434_v6, 2 }
  0xa4   : > { %v488_v20 = vmul.f32 %v486_v62, %v972_v37  ;;  %v489_v21 = vmul.f32 %v486_v62, %v974_v38  ;;  %v490_v22 = vmul.f32 %v486_v62, %v976_v39  ;;  %v495_v29 = vrot.slane %v487_v18, 4 }
  0xa5   : > { %v447_v23 = vadd.f32 %v439_v13, %v419_v9  ;;  %v448_v24 = vadd.f32 %v440_v15, %v420_v10  ;;  %v449_v25 = vadd.f32 %v441_v16, %v421_v11  ;;  %v450_v27 = vadd.f32 %v442_v17, %v422_v12  ;;  %v595_v28 = vpop.permute.xlu0 %594 }
  0xa6   : > { %v496_v30 = vrot.slane %v488_v20, 4  ;;  %v497_v31 = vrot.slane %v489_v21, 4  ;;  %v498_v32 = vrot.slane %v490_v22, 4  ;;  %v514_v43 = vrot.slane %v509_v7, %v962_v26 }
  0xa7   : > { %v475_v34 = vadd.f32 %v467_v51, %v447_v23  ;;  %v476_v40 = vadd.f32 %v468_v52, %v448_v24  ;;  %v477_v41 = vadd.f32 %v469_v59, %v449_v25  ;;  %v478_v42 = vadd.f32 %v470_v60, %v450_v27 }
  0xa8   : > { %v542_v44 = vrot.slane %v537_v8, %v962_v26  ;;  %v570_v45 = vrot.slane %v565_v33, %v962_v26  ;;  %v600_v46 = vrot.slane %v595_v28, %v962_v26  ;;  %v515_v54 = vmul.f32 %v514_v43, %v970_v36 }
  0xa9   : > { %v503_v47 = vadd.f32 %v495_v29, %v475_v34  ;;  %v504_v48 = vadd.f32 %v496_v30, %v476_v40  ;;  %v505_v49 = vadd.f32 %v497_v31, %v477_v41  ;;  %v506_v53 = vadd.f32 %v498_v32, %v478_v42 }
  0xaa   : > { %v516_v55 = vmul.f32 %v514_v43, %v972_v37  ;;  %v517_v51 = vmul.f32 %v514_v43, %v974_v38  ;;  %v518_v52 = vmul.f32 %v514_v43, %v976_v39  ;;  %v543_v56 = vmul.f32 %v542_v44, %v970_v36 }
  0xab   : > { %v544_v57 = vmul.f32 %v542_v44, %v972_v37  ;;  %v545_v58 = vmul.f32 %v542_v44, %v974_v38  ;;  %v546_v26 = vmul.f32 %v542_v44, %v976_v39  ;;  %v523_v59 = vrot.slane %v515_v54, 5 }
  0xac   : > { %v524_v60 = vrot.slane %v516_v55, 5  ;;  %v525_v61 = vrot.slane %v517_v51, 5  ;;  %v526_v62 = vrot.slane %v518_v52, 5  ;;  %v551_v63 = vrot.slane %v543_v56, 6 }
  0xad   : > { %v552_v0 = vrot.slane %v544_v57, 6  ;;  %v553_v1 = vrot.slane %v545_v58, 6  ;;  %v554_v2 = vrot.slane %v546_v26, 6  ;;  %v531_v3 = vadd.f32 %v523_v59, %v503_v47 }
  0xae   : > { %v532_v4 = vadd.f32 %v524_v60, %v504_v48  ;;  %v533_v5 = vadd.f32 %v525_v61, %v505_v49  ;;  %v534_v6 = vadd.f32 %v526_v62, %v506_v53  ;;  %v571_v7 = vmul.f32 %v570_v45, %v970_v36 }
  0xaf   : > { %v572_v8 = vmul.f32 %v570_v45, %v972_v37  ;;  %v573_v9 = vmul.f32 %v570_v45, %v974_v38  ;;  %v574_v10 = vmul.f32 %v570_v45, %v976_v39  ;;  %v559_v11 = vadd.f32 %v551_v63, %v531_v3 }
  0xb0   : > { %v560_v12 = vadd.f32 %v552_v0, %v532_v4  ;;  %v561_v13 = vadd.f32 %v553_v1, %v533_v5  ;;  %v562_v15 = vadd.f32 %v554_v2, %v534_v6  ;;  %v579_v16 = vrot.slane %v571_v7, 7 }
  0xb1   : > { %v580_v17 = vrot.slane %v572_v8, 7  ;;  %v581_v18 = vrot.slane %v573_v9, 7  ;;  %v582_v20 = vrot.slane %v574_v10, 7  ;;  %v616_v36 = vsub.s32 %v613_v50, %v959_v19 }
  0xb2   : > { %v587_v21 = vadd.f32 %v579_v16, %v559_v11 }
  0xb3   : > { %v588_v22 = vadd.f32 %v580_v17, %v560_v12  ;;  %v589_v23 = vadd.f32 %v581_v18, %v561_v13  ;;  %v590_v24 = vadd.f32 %v582_v20, %v562_v15 }
  0xb4   : > { %v601_v37 = vadd.f32 %v600_v46, %v587_v21 }
  0xb5   : > { %v602_v38 = vadd.f32 %v600_v46, %v588_v22  ;;  %v603_v39 = vadd.f32 %v600_v46, %v589_v23  ;;  %v604_v25 = vadd.f32 %v600_v46, %v590_v24 }
  0xb7   : > { %v609_v27 = vcombine.low %v601_v37, %v602_v38  ;;  %v610_v28 = vcombine.low %v603_v39, %v604_v25 }
  0xb9   : > { %v617_v29 = vrot.slane %v609_v27, %v616_v36  ;;  %v624_v30 = vrot.slane %v610_v28, %v616_v36 }
  0xbb   : > { %v625_v31 = vcombine.low %v617_v29, %v624_v30 }
  0xbd   : > { %v632_v32 = vrot.slane %v625_v31, %v616_v36 }
  0xbf   : > { %638 = vst.msk [vmem:[%s347_s21] sm:$0xf] %vm636_vm0, %v632_v32 }
  0xc0 PF: > { %s19_s25 = sadd.s32 1, %s875_s25   ;;  %s1047_s23 = smov %s871_s24 }
  0xc1   : > { %p16_p5 = scmp.ge.s32.totalorder %s19_s25, 4   ;;  %s1048_s24 = smov %s1050_s4 }
  0xc3   :  { %18 = sbr.rel (!%p16_p5) target bundleno = 3 (0x3), region = 88 }

// kernel: conv_bias2_forward.2
= control target key start
LH: loop header
LB: loop body
LE: loop exit
PB: predicated region body
PF: predicated region fallthrough
CT: control target
= control target key end

     0   :  { %s2574_s21 = smov 0   ;;  %s2576_s22 = smov 0   ;;  %s3176_s0 = inlined_call_operand.vmem [shape: f32[2,1,4,640], index: 0, kind: input, shape index: {}]   ;;  %s3177_s1 = inlined_call_operand.vmem [shape: f32[4,512], index: 1, kind: input, shape index: {}]   ;;  %s3178_s2 = inlined_call_operand.vmem [shape: f32[2,4], index: 2, kind: input, shape index: {}]   ;;  %s3179_s3 = inlined_call_operand.vmem [shape: f32[2,1], index: 3, kind: input, shape index: {}]   ;;  %s3180_s4 = inlined_call_operand.vmem [shape: f32[3,2,2], index: 4, kind: input, shape index: {}]   ;;  %s3181_s5 = inlined_call_operand.vmem [shape: f32[2,1], index: 5, kind: input, shape index: {}]   ;;  %s3182_s6 = inlined_call_operand.vmem [shape: f32[3,2,2], index: 6, kind: input, shape index: {}]   ;;  %s3183_s7 = inlined_call_operand.vmem [shape: f32[2,1], index: 7, kind: input, shape index: {}]   ;;  %s3184_s8 = inlined_call_operand.vmem [shape: f32[3,2,2], index: 8, kind: input, shape index: {}]   ;;  %s3185_s9 = inlined_call_operand.vmem [shape: f32[2,1], index: 9, kind: input, shape index: {}]   ;;  %s3186_s10 = inlined_call_operand.vmem [shape: f32[8,2], index: 10, kind: input, shape index: {}]   ;;  %s3187_s11 = inlined_call_operand.vmem [shape: f32[8,1], index: 11, kind: input, shape index: {}]   ;;  %s3188_s12 = inlined_call_operand.vmem [shape: f32[8,4], index: 12, kind: input, shape index: {}]   ;;  %s3189_s13 = inlined_call_operand.vmem [shape: f32[8,1], index: 13, kind: input, shape index: {}]   ;;  %s3190_s14 = inlined_call_operand.vmem [shape: f32[2,8,512], index: 14, kind: output, shape index: {0}]   ;;  %s3191_s15 = inlined_call_operand.vmem [shape: f32[2,8,1], index: 15, kind: output, shape index: {1}]   ;;  %s3192_s16 = inlined_call_operand.vmem [shape: f32[2,8,1], index: 16, kind: output, shape index: {2}]  }
   0x1   :  { %3212 = sst [smem:[#allocation14_spill]] %s3176_s0  ;;  %s2578_s23 = smov 0  }
   0x2 LB: > { %s39_s24 = sadd.s32 1, %s2468_s22  ;;  %p2365_p0 = scmp.ge.s32.totalorder %s2472_s23, 1  ;;  %s2472_s23 = sphi %s2578_s23, %s27_s23   ;;  %s2468_s22 = sphi %s2576_s22, %s3244_s22   ;;  %s2464_s21 = sphi %s2574_s21, %s3243_s21  }
   0x3   : > { %p41_p1 = scmp.ge.s32.totalorder %s39_s24, 2  ;;  %p487_p2 = scmp.lt.s32.totalorder %s2472_s23, 3 }
   0x5   : > { %s3246_s24 = smov (%p41_p1, %s39_s24), 0  ;;  %p488_p3 = pnand %p2365_p0, %p487_p2 }
   0x7   : > { %491 = sbr.rel (%p488_p3) target bundleno = 1151 (0x47f), region = 76 }
   0xe   : > { %v583_v0 = vld [vmem:[%s3178_s2] sm:$0x3]  ;;  %v3193_v1 = vmov 2   ;;  %v3197_v2 = vmov 0   ;;  %v3194_v3 = vmov 3   ;;  %v3195_v4 = vmov 1  }
   0xf   : > { %2425 = vset.pattern.permute.xlu1 %v3193_v1  ;;  %2423 = vset.pattern.permute.xlu0 %v3197_v2  ;;  %v819_v5 = vld [vmem:[%s3179_s3] sm:$0x3]  ;;  %v2371_v6 = vld [vmem:[%s3180_s4 + $0x2] sm:$0x3]  ;;  %v2372_v9 = vld [vmem:[%s3180_s4 + $0x4] sm:$0x3]  ;;  %v592_v10 = vlaneseq }
  0x10   : > { %702 = vperm.xlu1 %2425, %v583_v0   ;;  %586 = vperm.xlu0 %2423, %v583_v0   ;;  %v885_v7 = vld [vmem:[%s3180_s4] sm:$0x3]  ;;  %p553_p4 = scmp.lt.s32.totalorder %s2464_s21, 1  ;;  %s3213_s29 = sld [smem:[#allocation14_spill]]  ;;  %v2478_v52 = vmov 1983009808  }
  0x11   : > { %v1028_v8 = vld [vmem:[%s3181_s5] sm:$0x3]  ;;  %v2630_v11 = vshrl.u32 %v592_v10, 7  ;;  %v1049_v53 = vunpack.c.l.s4 %v2478_v52  ;;  %v2715_v59 = vand.u32 127, %v592_v10  ;;  %s2479_s18 = smov 64   ;;  %s2480_s19 = smov 16  }
  0x12   : > { %s3248_s21 = smov (!%p553_p4, %s2464_s21), 1  ;;  %v2720_v60 = vld [vmem:[%s3177_s1 + $0x1] ss:$4 sm:$0xf]  ;;  %vm1038_vm2 = vcmask 58368   ;;  %vm1040_vm3 = vcmask 123968  }
  0x13   : > { %s2383_s26 = smul.u32 20, %s3248_s21  ;;  %v2636_v12 = vsub.s32 0, %v2630_v11  ;;  %v2639_v13 = vsub.s32 4, %v2630_v11  ;;  %v2642_v16 = vsub.s32 2, %v2630_v11  ;;  %v2645_v18 = vsub.s32 6, %v2630_v11  ;;  %s2482_s28 = smov 8  }
  0x14   : > { %2426 = vset.pattern.permute.xlu1 %v3194_v3  ;;  %2424 = vset.pattern.permute.xlu0 %v3195_v4  ;;  %v2653_v24 = vsub.s32 1, %v2630_v11  ;;  %v2657_v26 = vsub.s32 5, %v2630_v11  ;;  %v2660_v27 = vsub.s32 3, %v2630_v11  ;;  %v2664_v29 = vsub.s32 7, %v2630_v11  ;;  %s2483_s20 = smov 112   ;;  %s2484_s25 = smov 9  }
  0x15   : > { %761 = vperm.xlu1 %2426, %v583_v0   ;;  %643 = vperm.xlu0 %2424, %v583_v0   ;;  %v1050_v10 = vunpack.c.0.s8 %v1049_v53  ;;  %vm841_vm0 = vcmp.lt.s32.totalorder %v2715_v59, 64  ;;  %vm988_vm4 = vcmask 523264   ;;  %vm1070_vm5 = vcmask 1041472   ;;  %s2487_s27 = smov 71  }
  0x16   : > { %s561_s30 = scalar_lea.vmem %s3213_s29, %s2383_s26  ;;  %vm1071_vm6 = vcmask 1043458   ;;  %vm1073_vm8 = vcmask 1045508   ;;  %vm1075_vm10 = vcmask 1047558   ;;  %vm1066_vm11 = vcmask 64512   ;;  %s2369_s29 = sshll.u32 %s3248_s21, 3 }
  0x17   : > { %v580_v14 = vld [vmem:[%s561_s30] sm:$0xff]  ;;  %v581_v15 = vld [vmem:[%s561_s30 + $0x8] sm:$0xff]  ;;  %v582_v17 = vld [vmem:[%s561_s30 + $0x10] sm:$0xf]  ;;  %vm1157_vm13 = vcmask 130048   ;;  %vm1450_vm14 = vcmask 916480   ;;  %s3139_s17 = scalar_lea.vmem %s3191_s15, %s2369_s29 }
  0x18   : > { %v595_v19 = vrot.slane %v580_v14, %v2636_v12  ;;  %v599_v20 = vrot.slane %v580_v14, %v2639_v13  ;;  %v603_v21 = vrot.slane %v581_v15, %v2636_v12  ;;  %v607_v22 = vrot.slane %v581_v15, %v2639_v13  ;;  %vm1072_vm7 = vmor %vm1071_vm6, %vm1070_vm5  ;;  %s2485_s30 = smov 7  }
  0x19   : > { %2427 = vset.pattern.permute.xlu1 %v3197_v2  ;;  %2428 = vset.pattern.permute.xlu0 %v3197_v2  ;;  %v611_v23 = vrot.slane %v582_v17, %v2636_v12  ;;  %v708_v25 = vrot.slane %v580_v14, %v2642_v16  ;;  %v712_v28 = vrot.slane %v580_v14, %v2645_v18  ;;  %vm1074_vm9 = vmor %vm1073_vm8, %vm1072_vm7  ;;  %vm1588_vm15 = vcmask 72704  }
  0x1a   : > { %822 = vperm.xlu1 %2427, %v819_v5   ;;  %943 = vperm.xlu0 %2428, %v2371_v6   ;;  %v2667_v30 = vrot.slane %v595_v19, %v2636_v12  ;;  %v2670_v31 = vrot.slane %v599_v20, %v2636_v12  ;;  %v2673_v32 = vrot.slane %v603_v21, %v2636_v12  ;;  %vm2838_vm12 = vmor %vm1075_vm10, %vm1074_vm9 }
  0x1b   : > { %v2676_v33 = vrot.slane %v607_v22, %v2636_v12  ;;  %v2679_v34 = vrot.slane %v611_v23, %v2636_v12  ;;  %v716_v35 = vrot.slane %v581_v15, %v2642_v16  ;;  %v720_v36 = vrot.slane %v581_v15, %v2645_v18 }
  0x1c   : > { %v724_v37 = vrot.slane %v582_v17, %v2642_v16  ;;  %v2685_v38 = vrot.slane %v708_v25, %v2642_v16  ;;  %v649_v39 = vrot.slane %v580_v14, %v2653_v24  ;;  %v653_v40 = vrot.slane %v580_v14, %v2657_v26 }
  0x1d   : > { %3214 = vst [vmem:[#allocation3_spill] sm:$0xff] %v2679_v34  ;;  %v657_v41 = vrot.slane %v581_v15, %v2653_v24  ;;  %v661_v42 = vrot.slane %v581_v15, %v2657_v26  ;;  %v665_v43 = vrot.slane %v582_v17, %v2653_v24  ;;  %v767_v44 = vrot.slane %v580_v14, %v2660_v27 }
  0x1e   : > { %2429 = vset.pattern.permute.xlu1 %v3195_v4  ;;  %2431 = vset.pattern.permute.xlu0 %v3195_v4  ;;  %v771_v45 = vrot.slane %v580_v14, %v2664_v29  ;;  %v775_v46 = vrot.slane %v581_v15, %v2660_v27  ;;  %v779_v47 = vrot.slane %v581_v15, %v2664_v29 }
  0x1f   : > { %956 = vperm.xlu1 %2429, %v2371_v6   ;;  %912 = vperm.xlu0 %2431, %v885_v7   ;;  %v783_v48 = vrot.slane %v582_v17, %v2660_v27  ;;  %v2698_v49 = vrot.slane %v712_v28, %v2642_v16  ;;  %v2701_v50 = vrot.slane %v716_v35, %v2642_v16 }
  0x20   : > { %v2704_v51 = vrot.slane %v720_v36, %v2642_v16  ;;  %v2707_v56 = vrot.slane %v724_v37, %v2642_v16  ;;  %v2710_v57 = vrot.slane %v649_v39, %v2653_v24  ;;  %v2713_v58 = vrot.slane %v653_v40, %v2653_v24 }
  0x21   : > { %3215 = vst [vmem:[#allocation4_spill] sm:$0xff] %v2698_v49  ;;  %3216 = vst [vmem:[#allocation5_spill] sm:$0xff] %v2701_v50  ;;  %v2723_v61 = vrot.slane %v657_v41, %v2653_v24  ;;  %v2726_v62 = vrot.slane %v661_v42, %v2653_v24  ;;  %v2729_v63 = vrot.slane %v665_v43, %v2653_v24 }
  0x22   : > { %3217 = vst [vmem:[#allocation6_spill] sm:$0xff] %v2704_v51  ;;  %3218 = vst [vmem:[#allocation7_spill] sm:$0xff] %v2707_v56  ;;  %v2732_v0 = vrot.slane %v767_v44, %v2660_v27  ;;  %v2735_v5 = vrot.slane %v771_v45, %v2660_v27  ;;  %v2738_v6 = vrot.slane %v775_v46, %v2660_v27 }
  0x23   : > { %2430 = vset.pattern.permute.xlu1 %v3197_v2  ;;  %2433 = vset.pattern.permute.xlu0 %v3197_v2  ;;  %3219 = vst [vmem:[#allocation8_spill] sm:$0xff] %v2729_v63  ;;  %v1124_v14 = vrot.slane %v2720_v60, %v2636_v12  ;;  %v1128_v15 = vrot.slane %v2720_v60, %v2653_v24 }
  0x24   : > { %888 = vperm.xlu1 %2430, %v885_v7   ;;  %1031 = vperm.xlu0 %2433, %v1028_v8   ;;  %3220 = vst [vmem:[#allocation9_spill] sm:$0xff] %v2732_v0  ;;  %3221 = vst [vmem:[#allocation10_spill] sm:$0xff] %v2735_v5  ;;  %v2741_v7 = vrot.slane %v779_v47, %v2660_v27  ;;  %v2744_v8 = vrot.slane %v783_v48, %v2660_v27 }
  0x25   : > { %3222 = vst [vmem:[#allocation11_spill] sm:$0xff] %v2738_v6 }
  0x26   : > { %3223 = vst [vmem:[#allocation12_spill] sm:$0xff] %v2741_v7  ;;  %3224 = vst [vmem:[#allocation13_spill] sm:$0xff] %v2744_v8 }
  0x28   : > { %1005 = vperm.xlu1 %2430, %v2372_v9   ;;  %2435 = vset.pattern.permute.xlu0 %v3195_v4 }
  0x2c   : > { %2432 = vset.pattern.permute.xlu1 %v3195_v4 }
  0x2d   : > { %1013 = vperm.xlu1 %2432, %v2372_v9  }
  0x31   : > { %2434 = vset.pattern.permute.xlu1 %v3197_v2 }
  0x8f   : > { %v587_v54 = vpop.permute.xlu0 %586  ;;  %v703_v55 = vpop.permute.xlu1 %702 }
  0x90   : > { %v637_v9 = vmul.f32 %v2667_v30, %v587_v54  ;;  %v638_v17 = vmul.f32 %v2670_v31, %v587_v54  ;;  %v639_v19 = vmul.f32 %v2673_v32, %v587_v54  ;;  %v640_v20 = vmul.f32 %v2676_v33, %v587_v54 }
  0x91   : > { %v641_v21 = vmul.f32 %v2679_v34, %v587_v54  ;;  %v750_v22 = vmul.f32 %v2685_v38, %v703_v55  ;;  %v751_v23 = vmul.f32 %v2698_v49, %v703_v55  ;;  %v752_v25 = vmul.f32 %v2701_v50, %v703_v55 }
  0x92   : > { %v753_v28 = vmul.f32 %v2704_v51, %v703_v55  ;;  %v754_v53 = vmul.f32 %v2707_v56, %v703_v55 }
  0x94   : > { %v644_v35 = vpop.permute.xlu0 %643  ;;  %v762_v36 = vpop.permute.xlu1 %761 }
  0x95   : > { %v691_v37 = vmul.f32 %v2710_v57, %v644_v35  ;;  %v692_v39 = vmul.f32 %v2713_v58, %v644_v35  ;;  %v693_v40 = vmul.f32 %v2723_v61, %v644_v35  ;;  %v694_v41 = vmul.f32 %v2726_v62, %v644_v35 }
  0x96   : > { %v695_v42 = vmul.f32 %v2729_v63, %v644_v35  ;;  %v809_v43 = vmul.f32 %v2732_v0, %v762_v36  ;;  %v810_v44 = vmul.f32 %v2735_v5, %v762_v36  ;;  %v811_v45 = vmul.f32 %v2738_v6, %v762_v36 }
  0x97   : > { %v696_v46 = vadd.f32 %v691_v37, %v637_v9  ;;  %v697_v47 = vadd.f32 %v692_v39, %v638_v17  ;;  %v698_v48 = vadd.f32 %v693_v40, %v639_v19  ;;  %v699_v52 = vadd.f32 %v694_v41, %v640_v20 }
  0x98   : > { %v700_v54 = vadd.f32 %v695_v42, %v641_v21  ;;  %v812_v1 = vmul.f32 %v2741_v7, %v762_v36  ;;  %v813_v3 = vmul.f32 %v2744_v8, %v762_v36  ;;  %v1132_v9 = vrot.slane %v2720_v60, %v2642_v16 }
  0x99   : > { %v823_v4 = vpop.permute.xlu1 %822  ;;  %v755_v2 = vadd.f32 %v750_v22, %v696_v46  ;;  %v756_v35 = vadd.f32 %v751_v23, %v697_v47  ;;  %v757_v63 = vadd.f32 %v752_v25, %v698_v48  ;;  %v758_v34 = vadd.f32 %v753_v28, %v699_v52  ;;  %v2770_v50 = vpop.permute.xlu0 %943 }
  0x9a   : > { %v759_v0 = vadd.f32 %v754_v53, %v700_v54  ;;  %v1136_v17 = vrot.slane %v2720_v60, %v2660_v27  ;;  %v840_v36 = vadd.s32 512, %v2715_v59  ;;  %v2778_v22 = vsub.s32 %v1050_v10, %v2630_v11 }
  0x9b   : > { %v814_v55 = vadd.f32 %v809_v43, %v755_v2  ;;  %v815_v19 = vadd.f32 %v810_v44, %v756_v35  ;;  %v816_v20 = vadd.f32 %v811_v45, %v757_v63  ;;  %v817_v21 = vadd.f32 %v812_v1, %v758_v34 }
  0x9c   : > { %v818_v37 = vadd.f32 %v813_v3, %v759_v0  ;;  %v1137_v23 = vcombine.low %v1124_v14, %v1128_v15  ;;  %v1138_v60 = vcombine.low %v1132_v9, %v1136_v17  ;;  %vm859_vm1 = vcmp.ge.s32.totalorder %v840_v36, 576 }
  0x9d   : > { %v825_v25 = vadd.f32 %v823_v4, %v814_v55  ;;  %v826_v28 = vadd.f32 %v823_v4, %v815_v19  ;;  %v827_v39 = vadd.f32 %v823_v4, %v816_v20  ;;  %v828_v40 = vadd.f32 %v823_v4, %v817_v21 }
  0x9e   : > { %v829_v41 = vadd.f32 %v823_v4, %v818_v37  ;;  %v957_v42 = vpop.permute.xlu1 %956  ;;  %v913_v3 = vpop.permute.xlu0 %912  ;;  %v1145_v34 = vrot.slane %v1137_v23, %v2778_v22  ;;  %v1152_v52 = vrot.slane %v1138_v60, %v2778_v22 }
  0x9f   : > { %v830_v2 = vmax.f32 %v825_v25, 0.0  ;;  %v831_v43 = vmax.f32 %v826_v28, 0.0  ;;  %v832_v63 = vmax.f32 %v827_v39, 0.0  ;;  %v833_v1 = vmax.f32 %v828_v40, 0.0 }
  0xa0   : > { %v834_v11 = vmax.f32 %v829_v41, 0.0 }
  0xa1   : > { %v880_v0 = vsel %vm841_vm0, 0.0, %v830_v2  ;;  %v922_v10 = vrot.slane %v831_v43, %v2653_v24  ;;  %v926_v14 = vrot.slane %v832_v63, %v2653_v24  ;;  %v898_v59 = vrot.slane %v831_v43, %v2636_v12 }
  0xa2   : > { %v918_v4 = vrot.slane %v880_v0, %v2653_v24  ;;  %v894_v15 = vrot.slane %v880_v0, %v2636_v12  ;;  %v902_v44 = vrot.slane %v832_v63, %v2636_v12  ;;  %v930_v45 = vrot.slane %v833_v1, %v2653_v24 }
  0xa3   : > { %v932_v46 = vmul.f32 %v922_v10, %v913_v3  ;;  %v889_v47 = vpop.permute.xlu1 %888  ;;  %v906_v48 = vrot.slane %v833_v1, %v2636_v12  ;;  %v933_v54 = vmul.f32 %v926_v14, %v913_v3  ;;  %v884_v55 = vsel %vm859_vm1, 0.0, %v834_v11 }
  0xa4   : > { %v931_v53 = vmul.f32 %v918_v4, %v913_v3  ;;  %v907_v35 = vmul.f32 %v894_v15, %v889_v47  ;;  %v908_v9 = vmul.f32 %v898_v59, %v889_v47  ;;  %v909_v17 = vmul.f32 %v902_v44, %v889_v47 }
  0xa5   : > { %v952_v19 = vmul.f32 %v2770_v50, %v902_v44  ;;  %v965_v20 = vmul.f32 %v957_v42, %v926_v14  ;;  %v949_v21 = vrot.slane %v884_v55, %v2636_v12  ;;  %v951_v37 = vmul.f32 %v2770_v50, %v898_v59 }
  0xa6   : > { %v964_v23 = vmul.f32 %v957_v42, %v922_v10  ;;  %v962_v25 = vrot.slane %v884_v55, %v2653_v24  ;;  %v934_v28 = vmul.f32 %v930_v45, %v913_v3  ;;  %v910_v39 = vmul.f32 %v906_v48, %v889_v47 }
  0xa7   : > { %v1006_v40 = vpop.permute.xlu1 %1005  ;;  %v970_v41 = vadd.f32 %v965_v20, %v952_v19  ;;  %v950_v60 = vmul.f32 %v2770_v50, %v894_v15  ;;  %v963_v2 = vmul.f32 %v957_v42, %v918_v4  ;;  %v954_v43 = vmul.f32 %v949_v21, %v2770_v50 }
  0xa8   : > { %v969_v36 = vadd.f32 %v964_v23, %v951_v37  ;;  %v967_v63 = vmul.f32 %v962_v25, %v957_v42  ;;  %v1153_v1 = vcombine.low %v1145_v34, %v1152_v52  ;;  %v953_v11 = vmul.f32 %v2770_v50, %v906_v48 }
  0xa9   : > { %982 = vrot.lane.b32.xlu0 %v970_v41, %s2479_s18  ;;  %v936_v0 = vadd.f32 %v932_v46, %v908_v9  ;;  %v935_v8 = vadd.f32 %v931_v53, %v907_v35  ;;  %v937_v55 = vadd.f32 %v933_v54, %v909_v17  ;;  %v1008_v3 = vmul.f32 %v1006_v40, %v898_v59 }
  0xaa   : > { %v1009_v47 = vmul.f32 %v1006_v40, %v902_v44  ;;  %980 = vrot.lane.b32.xlu1 %v969_v36, %s2479_s18  ;;  %v972_v19 = vadd.f32 %v967_v63, %v954_v43  ;;  %v938_v15 = vadd.f32 %v934_v28, %v910_v39  ;;  %v1010_v4 = vmul.f32 %v1006_v40, %v906_v48  ;;  %v2375_v48 = vld [vmem:[%s3182_s6 + $0x4] sm:$0x3] }
  0xab   : > { %v1011_v20 = vmul.f32 %v1006_v40, %v949_v21  ;;  %v968_v6 = vadd.f32 %v963_v2, %v950_v60  ;;  %v966_v37 = vmul.f32 %v957_v42, %v930_v45  ;;  %v2374_v42 = vld [vmem:[%s3182_s6 + $0x2] sm:$0x3]  ;;  %vm1543_vm0 = vcmask 56320  }
  0xac   : > { %v1014_v41 = vpop.permute.xlu1 %1013  ;;  %vm1924_vm1 = vcmask 1031168  }
  0xad   : > { %986 = vrot.lane.b32.xlu0 %v972_v19, %s2479_s18  ;;  %v1016_v23 = vmul.f32 %v1014_v41, %v922_v10  ;;  %v1017_v34 = vmul.f32 %v1014_v41, %v926_v14  ;;  %v1018_v52 = vmul.f32 %v1014_v41, %v930_v45  ;;  %v1019_v50 = vmul.f32 %v1014_v41, %v962_v25  ;;  %v1032_v45 = vpop.permute.xlu0 %1031 }
  0xae   : > { %978 = vrot.lane.b32.xlu1 %v968_v6, %s2479_s18  ;;  %v971_v54 = vadd.f32 %v966_v37, %v953_v11  ;;  %v3225_v10 = vmov 0   ;;  %v3226_v6 = vmov 1   ;;  %v3205_v14 = vmov 0.0  }
  0xaf   : > { %v1021_v46 = vadd.f32 %v1017_v34, %v1009_v47  ;;  %v1020_v59 = vadd.f32 %v1016_v23, %v1008_v3  ;;  %v1022_v44 = vadd.f32 %v1018_v52, %v1010_v4  ;;  %v1023_v53 = vadd.f32 %v1019_v50, %v1011_v20  ;;  %1039 = vst.msk [vmem:[#allocation2] sm:$0x3] %vm1038_vm2, %v3205_v14 }
  0xb0   : > { %1041 = vst.msk [vmem:[#allocation2 + $0x8] sm:$0x3] %vm1040_vm3, %v3205_v14  ;;  %vm2161_vm3 = vcmask 7168  }
  0xb1   : > { %1154 = vrot.lane.b32.xlu0 %v1153_v1, %s2480_s19 }
  0xb2   : > { %984 = vrot.lane.b32.xlu1 %v971_v54, %s2479_s18  ;;  %s2486_s18 = smov 126  }
  0xb5   : > { %1377 = vperm.xlu0 %2435, %v2375_v48  }
  0xb9   : > { %2437 = vset.pattern.permute.xlu0 %v3225_v10 }
  0xba   : > { %1262 = vperm.xlu0 %2437, %v2374_v42  }
  0xbe   : > { %2439 = vset.pattern.permute.xlu0 %v3226_v6 }
 0x11b   : > { %v983_v35 = vpop.permute.xlu0 %982 }
 0x11c   : > { %v981_v9 = vpop.permute.xlu1 %980 }
 0x11d   : > { %v990_v17 = vsel %vm988_vm4, %v981_v9, %v983_v35 }
 0x11e   : > { %v998_v21 = vadd.f32 %v990_v17, %v936_v0 }
 0x11f   : > { %v987_v60 = vpop.permute.xlu0 %986 }
 0x120   : > { %v1025_v25 = vadd.f32 %v1021_v46, %v998_v21  ;;  %v979_v28 = vpop.permute.xlu1 %978 }
 0x121   : > { %v989_v39 = vsel %vm988_vm4, %v979_v28, %v981_v9 }
 0x122   : > { %v997_v40 = vadd.f32 %v989_v39, %v935_v8  ;;  %v2815_v1 = vadd.f32 %v1032_v45, %v1025_v25 }
 0x124   : > { %v1024_v2 = vadd.f32 %v1020_v59, %v997_v40  ;;  %v985_v36 = vpop.permute.xlu1 %984 }
 0x125   : > { %v991_v43 = vsel %vm988_vm4, %v983_v35, %v985_v36  ;;  %v992_v63 = vsel %vm988_vm4, %v985_v36, %v987_v60  ;;  %vm2145_vm4 = vcmask 990208  }
 0x126   : > { %v2817_v11 = vadd.f32 %v1032_v45, %v1024_v2  ;;  %v999_v3 = vadd.f32 %v991_v43, %v937_v55  ;;  %v1000_v47 = vadd.f32 %v992_v63, %v938_v15  ;;  %v1163_v55 = vld [vmem:[%s3182_s6] sm:$0x3] }
 0x127   : > { %v1463_v15 = vld [vmem:[%s3183_s7] sm:$0x3] }
 0x128   : > { %v1026_v19 = vadd.f32 %v1022_v44, %v999_v3  ;;  %v1027_v4 = vadd.f32 %v1023_v53, %v1000_v47  ;;  %v1046_v0 = vcombine.low %v2817_v11, %v2815_v1  ;;  %v1155_v44 = vpop.permute.xlu0 %1154 }
 0x129   : > { %v1156_v53 = vrot.slane %v1155_v44, 6 }
 0x12a   : > { %v2821_v20 = vadd.f32 %v1032_v45, %v1026_v19  ;;  %v2823_v41 = vadd.f32 %v1032_v45, %v1027_v4  ;;  %v1054_v37 = vrot.slane %v1046_v0, %v2778_v22 }
 0x12b   : > { %v1158_v54 = vsel %vm1157_vm13, %v1156_v53, %v1155_v44 }
 0x12c   : > { %v1047_v8 = vcombine.low %v2821_v20, %v2823_v41 }
 0x12e   : > { %v1061_v23 = vrot.slane %v1047_v8, %v2778_v22 }
 0x130   : > { %v1062_v34 = vcombine.low %v1054_v37, %v1061_v23 }
 0x132   : > { %1063 = vrot.lane.b32.xlu1 %v1062_v34, %s2482_s28 }
 0x134   : > { %v1378_v19 = vpop.permute.xlu0 %1377 }
 0x136   : > { %1321 = vperm.xlu1 %2434, %v2375_v48  }
 0x13a   : > { %1166 = vperm.xlu1 %2434, %v1163_v55  }
 0x13e   : > { %2436 = vset.pattern.permute.xlu1 %v3226_v6 }
 0x13f   : > { %1211 = vperm.xlu1 %2436, %v1163_v55  }
 0x143   : > { %1286 = vperm.xlu1 %2436, %v2374_v42   ;;  %v2377_v42 = vld [vmem:[%s3177_s1 + $0x3] ss:$4 sm:$0xf] }
 0x144   : > { %v1555_v9 = vrot.slane %v2377_v42, %v2636_v12  ;;  %v1559_v40 = vrot.slane %v2377_v42, %v2653_v24  ;;  %v1563_v60 = vrot.slane %v2377_v42, %v2642_v16  ;;  %v1567_v2 = vrot.slane %v2377_v42, %v2660_v27 }
 0x147   : > { %2438 = vset.pattern.permute.xlu1 %v3225_v10 }
 0x148   : > { %1466 = vperm.xlu1 %2438, %v1463_v15  }
 0x1a4   : > { %v1064_v52 = vpop.permute.xlu1 %1063 }
 0x1a5   : > { %v1065_v46 = vrot.slane %v1064_v52, 6 }
 0x1a7   : > { %v1067_v59 = vsel %vm1066_vm11, %v1065_v46, %v1064_v52  ;;  %1078 = vst.msk [vmem:[#allocation2 + $0x8] sm:$0x3] %vm1038_vm2, %v1065_v46 }
 0x1a8   : > { %1077 = vst.msk [vmem:[#allocation2] sm:$0xff] %vm2838_vm12, %v1067_v59 }
 0x1ae   : > { %v1117_v35 = vld [vmem:[#allocation2 + $0x8] sm:$0x3] }
 0x1af   : > { %v2846_v48 = vld [vmem:[#allocation2] sm:$0xff]  ;;  %v1162_v39 = vmul.f32 %v1156_v53, %v1117_v35 }
 0x1b0   : > { %v1161_v45 = vmul.f32 %v1158_v54, %v2846_v48 }
 0x1b1   : > { %v1345_v42 = vrot.slane %v1162_v39, %v2636_v12  ;;  %v1399_v35 = vrot.slane %v1162_v39, %v2653_v24 }
 0x1b2   : > { %v1333_v17 = vrot.slane %v1161_v45, %v2642_v16  ;;  %v1387_v21 = vrot.slane %v1161_v45, %v2660_v27  ;;  %v1329_v25 = vrot.slane %v1161_v45, %v2636_v12  ;;  %v1383_v28 = vrot.slane %v1161_v45, %v2653_v24 }
 0x1b3   : > { %v1341_v4 = vrot.slane %v1161_v45, %v2645_v18  ;;  %v1395_v0 = vrot.slane %v1161_v45, %v2664_v29  ;;  %v1337_v8 = vrot.slane %v1161_v45, %v2639_v13  ;;  %v1391_v37 = vrot.slane %v1161_v45, %v2657_v26 }
 0x1b4   : > { %v1358_v43 = vrot.slane %v1333_v17, %v2636_v12  ;;  %v1412_v63 = vrot.slane %v1387_v21, %v2653_v24  ;;  %v1354_v3 = vrot.slane %v1329_v25, %v2636_v12  ;;  %v1408_v47 = vrot.slane %v1383_v28, %v2653_v24 }
 0x1b5   : > { %v1322_v36 = vpop.permute.xlu1 %1321  ;;  %v1366_v52 = vrot.slane %v1341_v4, %v2636_v12  ;;  %v1420_v46 = vrot.slane %v1395_v0, %v2653_v24  ;;  %v1362_v59 = vrot.slane %v1337_v8, %v2636_v12  ;;  %v1416_v44 = vrot.slane %v1391_v37, %v2653_v24 }
 0x1b6   : > { %v1372_v23 = vmul.f32 %v1358_v43, %v1322_v36  ;;  %v1426_v34 = vmul.f32 %v1412_v63, %v1378_v19  ;;  %v1371_v55 = vmul.f32 %v1354_v3, %v1322_v36  ;;  %v1425_v15 = vmul.f32 %v1408_v47, %v1378_v19 }
 0x1b7   : > { %v1374_v45 = vmul.f32 %v1366_v52, %v1322_v36  ;;  %v1428_v17 = vmul.f32 %v1420_v46, %v1378_v19  ;;  %v1373_v21 = vmul.f32 %v1362_v59, %v1322_v36  ;;  %v1427_v25 = vmul.f32 %v1416_v44, %v1378_v19 }
 0x1b8   : > { %v1431_v53 = vadd.f32 %v1426_v34, %v1372_v23  ;;  %v1430_v54 = vadd.f32 %v1425_v15, %v1371_v55  ;;  %v1568_v28 = vcombine.low %v1555_v9, %v1559_v40  ;;  %v1569_v43 = vcombine.low %v1563_v60, %v1567_v2  ;;  %v2881_v9 = vld [vmem:[%s3184_s8 + $0x2] sm:$0x3]  ;;  %v2897_v2 = vld [vmem:[%s3184_s8] sm:$0x3] }
 0x1b9   : > { %v1433_v63 = vadd.f32 %v1428_v17, %v1374_v45  ;;  %v1370_v3 = vrot.slane %v1345_v42, %v2636_v12  ;;  %v1424_v47 = vrot.slane %v1399_v35, %v2653_v24  ;;  %v1432_v4 = vadd.f32 %v1427_v25, %v1373_v21  ;;  %v2887_v40 = vld [vmem:[%s3188_s12] sm:$0xff]  ;;  %v1167_v44 = vpop.permute.xlu1 %1166 }
 0x1ba   : > { %1442 = vrot.lane.b32.xlu1 %v1431_v53, %s2483_s20  ;;  %1440 = vrot.lane.b32.xlu0 %v1430_v54, %s2483_s20  ;;  %v1576_v39 = vrot.slane %v1568_v28, %v2778_v22  ;;  %v1583_v37 = vrot.slane %v1569_v43, %v2778_v22  ;;  %v3229_v60 = vmov 3   ;;  %v1272_v25 = vrot.slane %v2815_v1, %v2636_v12  ;;  %v1263_v43 = vpop.permute.xlu0 %1262 }
 0x1bb   : > { %v1375_v0 = vmul.f32 %v1370_v3, %v1322_v36  ;;  %v1429_v8 = vmul.f32 %v1424_v47, %v1378_v19  ;;  %v1080_v36 = vld [vmem:[%s3177_s1] ss:$4 sm:$0xf]  ;;  %v1292_v47 = vrot.slane %v2817_v11, %v2653_v24 }
 0x1bc   : > { %v1584_v34 = vcombine.low %v1576_v39, %v1583_v37  ;;  %v1085_v19 = vrot.slane %v1080_v36, %v2636_v12  ;;  %v1089_v55 = vrot.slane %v1080_v36, %v2653_v24  ;;  %v1093_v15 = vrot.slane %v1080_v36, %v2642_v16 }
 0x1bd   : > { %v1434_v23 = vadd.f32 %v1429_v8, %v1375_v0  ;;  %v1097_v52 = vrot.slane %v1080_v36, %v2660_v27  ;;  %v1280_v0 = vrot.slane %v2823_v41, %v2636_v12  ;;  %v1300_v39 = vrot.slane %v2821_v20, %v2653_v24 }
 0x1be   : > { %1446 = vrot.lane.b32.xlu1 %v1433_v63, %s2483_s20  ;;  %1444 = vrot.lane.b32.xlu0 %v1432_v4, %s2483_s20  ;;  %v1098_v46 = vcombine.low %v1085_v19, %v1089_v55  ;;  %v1212_v35 = vpop.permute.xlu1 %1211  ;;  %v1268_v63 = vrot.slane %v2817_v11, %v2636_v12  ;;  %v1276_v4 = vrot.slane %v2821_v20, %v2636_v12 }
 0x1bf   : > { %v1099_v59 = vcombine.low %v1093_v15, %v1097_v52  ;;  %v1304_v11 = vrot.slane %v2823_v41, %v2653_v24  ;;  %v1282_v15 = vmul.f32 %v1272_v25, %v1263_v43 }
 0x1c0   : > { %v1106_v53 = vrot.slane %v1098_v46, %v2778_v22 }
 0x1c1   : > { %v1113_v54 = vrot.slane %v1099_v59, %v2778_v22 }
 0x1c2   : > { %1448 = vrot.lane.b32.xlu0 %v1434_v23, %s2483_s20  ;;  %v1287_v17 = vpop.permute.xlu1 %1286 }
 0x1c3   : > { %v1114_v42 = vcombine.low %v1106_v53, %v1113_v54  ;;  %v1308_v56 = vmul.f32 %v1304_v11, %v1287_v17 }
 0x1c5   : > { %v1116_v45 = vmul.f32 %v1114_v42, %v2846_v48  ;;  %v1296_v48 = vrot.slane %v2815_v1, %v2653_v24  ;;  %v1305_v1 = vmul.f32 %v1292_v47, %v1287_v17  ;;  %v1283_v47 = vmul.f32 %v1276_v4, %v1263_v43 }
 0x1c6   : > { %1585 = vrot.lane.b32.xlu0 %v1584_v34, %s2484_s25 }
 0x1c7   : > { %v1217_v21 = vrot.slane %v1116_v45, %v2653_v24  ;;  %v1173_v28 = vrot.slane %v1116_v45, %v2636_v12  ;;  %v1221_v3 = vrot.slane %v1116_v45, %v2660_v27  ;;  %v1177_v8 = vrot.slane %v1116_v45, %v2642_v16  ;;  %v1467_v37 = vpop.permute.xlu1 %1466 }
 0x1c8   : > { %v1225_v23 = vrot.slane %v1116_v45, %v2657_v26  ;;  %v1181_v36 = vrot.slane %v1116_v45, %v2639_v13  ;;  %v1229_v55 = vrot.slane %v1116_v45, %v2664_v29  ;;  %v1306_v46 = vmul.f32 %v1296_v48, %v1287_v17 }
 0x1c9   : > { %v1237_v34 = vrot.slane %v1217_v21, %v2653_v24  ;;  %v1193_v19 = vrot.slane %v1173_v28, %v2636_v12  ;;  %v1241_v52 = vrot.slane %v1221_v3, %v2653_v24  ;;  %v1185_v59 = vrot.slane %v1116_v45, %v2645_v18 }
 0x1ca   : > { %1739 = vperm.xlu0 %2439, %v2881_v9   ;;  %v1197_v53 = vrot.slane %v1177_v8, %v2636_v12  ;;  %v1245_v41 = vrot.slane %v1225_v23, %v2653_v24  ;;  %v1307_v21 = vmul.f32 %v1300_v39, %v1287_v17  ;;  %v1201_v28 = vrot.slane %v1181_v36, %v2636_v12 }
 0x1cb   : > { %v1250_v20 = vmul.f32 %v1237_v34, %v1212_v35  ;;  %v1206_v54 = vmul.f32 %v1193_v19, %v1167_v44  ;;  %v1251_v42 = vmul.f32 %v1241_v52, %v1212_v35  ;;  %v1249_v25 = vrot.slane %v1229_v55, %v2653_v24 }
 0x1cc   : > { %v1207_v14 = vmul.f32 %v1197_v53, %v1167_v44  ;;  %v1252_v48 = vmul.f32 %v1245_v41, %v1212_v35  ;;  %v1310_v7 = vadd.f32 %v1306_v46, %v1282_v15  ;;  %v1284_v8 = vmul.f32 %v1280_v0, %v1263_v43 }
 0x1cd   : > { %v1254_v45 = vadd.f32 %v1250_v20, %v1206_v54  ;;  %v1205_v19 = vrot.slane %v1185_v59, %v2636_v12  ;;  %v1208_v5 = vmul.f32 %v1201_v28, %v1167_v44  ;;  %v1253_v39 = vmul.f32 %v1249_v25, %v1212_v35 }
 0x1ce   : > { %2441 = vset.pattern.permute.xlu0 %v3225_v10  ;;  %v1255_v4 = vadd.f32 %v1251_v42, %v1207_v14  ;;  %v1312_v41 = vadd.f32 %v1308_v56, %v1284_v8 }
 0x1cf   : > { %2039 = vperm.xlu0 %2441, %v2887_v40   ;;  %v1209_v36 = vmul.f32 %v1205_v19, %v1167_v44  ;;  %v1256_v49 = vadd.f32 %v1252_v48, %v1208_v5  ;;  %v3230_v48 = vmov 2   ;;  %v2089_v19 = vld [vmem:[%s3189_s13] sm:$0xff] }
 0x1d0   : > { %v1314_v51 = vadd.f32 %v1310_v7, %v1255_v4 }
 0x1d1   : > { %v1257_v15 = vadd.f32 %v1253_v39, %v1209_v36 }
 0x1d3   : > { %2443 = vset.pattern.permute.xlu0 %v3229_v60  ;;  %v1281_v60 = vmul.f32 %v1268_v63, %v1263_v43  ;;  %v1316_v44 = vadd.f32 %v1312_v41, %v1257_v15 }
 0x1d4   : > { %2076 = vperm.xlu0 %2443, %v2887_v40  }
 0x1d5   : > { %v1309_v63 = vadd.f32 %v1305_v1, %v1281_v60  ;;  %v1311_v60 = vadd.f32 %v1307_v21, %v1283_v47 }
 0x1d7   : > { %v1313_v1 = vadd.f32 %v1309_v63, %v1254_v45  ;;  %v1315_v11 = vadd.f32 %v1311_v60, %v1256_v49  ;;  %v2379_v63 = vld [vmem:[%s3184_s8 + $0x4] sm:$0x3] }
 0x1d8   : > { %2445 = vset.pattern.permute.xlu0 %v3225_v10 }
 0x1d9   : > { %1597 = vperm.xlu0 %2445, %v2897_v2  }
 0x1dd   : > { %2448 = vset.pattern.permute.xlu0 %v3226_v6 }
 0x22c   : > { %v1441_v3 = vpop.permute.xlu0 %1440  ;;  %v1443_v34 = vpop.permute.xlu1 %1442 }
 0x22d   : > { %v1451_v23 = vsel %vm1450_vm14, %v1441_v3, %v1443_v34 }
 0x22e   : > { %v1459_v53 = vadd.f32 %v1451_v23, %v1313_v1 }
 0x230   : > { %v1447_v52 = vpop.permute.xlu1 %1446  ;;  %v1445_v55 = vpop.permute.xlu0 %1444  ;;  %v2946_v20 = vadd.f32 %v1467_v37, %v1459_v53 }
 0x231   : > { %v1452_v17 = vsel %vm1450_vm14, %v1443_v34, %v1445_v55  ;;  %v1453_v43 = vsel %vm1450_vm14, %v1445_v55, %v1447_v52 }
 0x232   : > { %v1460_v0 = vadd.f32 %v1452_v17, %v1314_v51  ;;  %v1461_v14 = vadd.f32 %v1453_v43, %v1315_v11  ;;  %v1721_v41 = vrot.slane %v2946_v20, %v2636_v12 }
 0x234   : > { %v2948_v35 = vadd.f32 %v1467_v37, %v1460_v0  ;;  %v1449_v46 = vpop.permute.xlu0 %1448  ;;  %v2953_v5 = vadd.f32 %v1467_v37, %v1461_v14 }
 0x235   : > { %v1454_v59 = vsel %vm1450_vm14, %v1447_v52, %v1449_v46  ;;  %v1745_v52 = vrot.slane %v2946_v20, %v2653_v24 }
 0x236   : > { %v1462_v54 = vadd.f32 %v1454_v59, %v1316_v44  ;;  %v1477_v56 = vcombine.low %v2946_v20, %v2948_v35  ;;  %v1749_v55 = vrot.slane %v2948_v35, %v2653_v24  ;;  %v1725_v50 = vrot.slane %v2948_v35, %v2636_v12 }
 0x237   : > { %v1729_v43 = vrot.slane %v2953_v5, %v2636_v12  ;;  %v1753_v20 = vrot.slane %v2953_v5, %v2653_v24 }
 0x238   : > { %v2955_v7 = vadd.f32 %v1467_v37, %v1462_v54  ;;  %v1485_v51 = vrot.slane %v1477_v56, %v2778_v22  ;;  %v2376_v37 = vld [vmem:[%s3177_s1 + $0x2] ss:$4 sm:$0xf]  ;;  %v1586_v4 = vpop.permute.xlu0 %1585 }
 0x239   : > { %v1510_v47 = vrot.slane %v2376_v37, %v2636_v12  ;;  %v1514_v28 = vrot.slane %v2376_v37, %v2653_v24  ;;  %v1518_v25 = vrot.slane %v2376_v37, %v2642_v16 }
 0x23a   : > { %v1478_v49 = vcombine.low %v2953_v5, %v2955_v7  ;;  %v1733_v0 = vrot.slane %v2955_v7, %v2636_v12  ;;  %v1757_v35 = vrot.slane %v2955_v7, %v2653_v24 }
 0x23b   : > { %v1523_v3 = vcombine.low %v1510_v47, %v1514_v28 }
 0x23c   : > { %v1492_v42 = vrot.slane %v1478_v49, %v2778_v22 }
 0x23d   : > { %v1531_v45 = vrot.slane %v1523_v3, %v2778_v22 }
 0x23e   : > { %v1493_v21 = vcombine.low %v1485_v51, %v1492_v42 }
 0x240   : > { %1494 = vrot.lane.b32.xlu1 %v1493_v21, %s2482_s28  ;;  %s2488_s28 = smov 121  }
 0x244   : > { %1715 = vperm.xlu1 %2438, %v2881_v9   ;;  %v1522_v9 = vrot.slane %v2376_v37, %v2660_v27 }
 0x246   : > { %v1524_v34 = vcombine.low %v1518_v25, %v1522_v9 }
 0x248   : > { %1795 = vperm.xlu1 %2438, %v2379_v63   ;;  %v1538_v8 = vrot.slane %v1524_v34, %v2778_v22 }
 0x249   : > { %v1740_v36 = vpop.permute.xlu0 %1739 }
 0x24a   : > { %v1539_v23 = vcombine.low %v1531_v45, %v1538_v8  ;;  %v1758_v14 = vmul.f32 %v1745_v52, %v1740_v36  ;;  %v1759_v46 = vmul.f32 %v1749_v55, %v1740_v36  ;;  %v1760_v28 = vmul.f32 %v1753_v20, %v1740_v36 }
 0x24b   : > { %v1761_v5 = vmul.f32 %v1757_v35, %v1740_v36 }
 0x24c   : > { %2440 = vset.pattern.permute.xlu1 %v3226_v6 }
 0x24d   : > { %1851 = vperm.xlu1 %2440, %v2379_v63  }
 0x24e   : > { %v2040_v52 = vpop.permute.xlu0 %2039 }
 0x24f   : > { %v2043_v20 = vmul.f32 %v2040_v52, %v2670_v31 }
 0x251   : > { %2048 = vperm.xlu1 %2440, %v2887_v40  }
 0x255   : > { %2442 = vset.pattern.permute.xlu1 %v3230_v48 }
 0x256   : > { %2062 = vperm.xlu1 %2442, %v2887_v40   ;;  %v1939_v40 = vld [vmem:[%s3185_s9] sm:$0x3] }
 0x25a   : > { %2444 = vset.pattern.permute.xlu1 %v3225_v10 }
 0x25b   : > { %2092 = vperm.xlu1 %2444, %v2089_v19  }
 0x25f   : > { %1540 = vrot.lane.b32.xlu1 %v1539_v23, %s2485_s30 }
 0x260   : > { %2446 = vset.pattern.permute.xlu1 %v3226_v6  ;;  %v1587_v6 = vrot.slane %v1586_v4, 6 }
 0x262   : > { %v1589_v53 = vsel %vm1588_vm15, %v1587_v6, %v1586_v4 }
 0x263   : > { %1653 = vperm.xlu1 %2446, %v2897_v2  }
 0x267   : > { %2447 = vset.pattern.permute.xlu1 %v3225_v10 }
 0x268   : > { %1942 = vperm.xlu1 %2447, %v1939_v40  }
 0x2b2   : > { %v1495_v22 = vpop.permute.xlu1 %1494 }
 0x2b3   : > { %v1496_v39 = vrot.slane %v1495_v22, 6 }
 0x2b5   : > { %v1497_v1 = vsel %vm1066_vm11, %v1496_v39, %v1495_v22  ;;  %1501 = vst.msk [vmem:[#allocation2 + $0x8] sm:$0x3] %vm1038_vm2, %v1496_v39  ;;  %vm2115_vm2 = vcmask 580608  }
 0x2b6   : > { %1500 = vst.msk [vmem:[#allocation2] sm:$0xff] %vm2838_vm12, %v1497_v1 }
 0x2bc   : > { %v2996_v60 = vld [vmem:[#allocation2 + $0x8] sm:$0x3] }
 0x2bd   : > { %v2994_v2 = vld [vmem:[#allocation2] sm:$0xff]  ;;  %v1593_v15 = vmul.f32 %v1587_v6, %v2996_v60 }
 0x2be   : > { %v3007_v17 = vmul.f32 %v1589_v53, %v2994_v2 }
 0x2bf   : > { %v1819_v21 = vrot.slane %v1593_v15, %v2636_v12  ;;  %v1873_v63 = vrot.slane %v1593_v15, %v2653_v24 }
 0x2c0   : > { %v1807_v37 = vrot.slane %v3007_v17, %v2642_v16  ;;  %v1861_v47 = vrot.slane %v3007_v17, %v2660_v27  ;;  %v1857_v7 = vrot.slane %v3007_v17, %v2653_v24  ;;  %v1869_v3 = vrot.slane %v3007_v17, %v2664_v29 }
 0x2c1   : > { %v1803_v34 = vrot.slane %v3007_v17, %v2636_v12  ;;  %v1844_v48 = vrot.slane %v1819_v21, %v2636_v12  ;;  %v1898_v45 = vrot.slane %v1873_v63, %v2653_v24  ;;  %v1815_v40 = vrot.slane %v3007_v17, %v2645_v18  ;;  %v2077_v63 = vpop.permute.xlu0 %2076 }
 0x2c2   : > { %v1832_v8 = vrot.slane %v1807_v37, %v2636_v12  ;;  %v1886_v19 = vrot.slane %v1861_v47, %v2653_v24  ;;  %v1882_v22 = vrot.slane %v1857_v7, %v2653_v24  ;;  %v1865_v39 = vrot.slane %v3007_v17, %v2657_v26 }
 0x2c3   : > { %v1716_v11 = vpop.permute.xlu1 %1715  ;;  %v1894_v53 = vrot.slane %v1869_v3, %v2653_v24  ;;  %v1828_v55 = vrot.slane %v1803_v34, %v2636_v12  ;;  %v1840_v15 = vrot.slane %v1815_v40, %v2636_v12  ;;  %v2045_v37 = vmul.f32 %v2040_v52, %v2676_v33  ;;  %v1955_v33 = vld [vmem:[%s3186_s10] sm:$0xff]  ;;  %v3236_v40 = vld [vmem:[#allocation3_spill] sm:$0xff] }
 0x2c4   : > { %v1734_v44 = vmul.f32 %v1721_v41, %v1716_v11  ;;  %v1735_v59 = vmul.f32 %v1725_v50, %v1716_v11  ;;  %v1736_v54 = vmul.f32 %v1729_v43, %v1716_v11  ;;  %v1737_v56 = vmul.f32 %v1733_v0, %v1716_v11 }
 0x2c5   : > { %v1811_v0 = vrot.slane %v3007_v17, %v2639_v13 }
 0x2c6   : > { %v1763_v49 = vadd.f32 %v1759_v46, %v1735_v59  ;;  %v1762_v51 = vadd.f32 %v1758_v14, %v1734_v44  ;;  %v1765_v25 = vadd.f32 %v1761_v5, %v1737_v56  ;;  %v1764_v9 = vadd.f32 %v1760_v28, %v1736_v54  ;;  %v3231_v5 = vld [vmem:[#allocation4_spill] sm:$0xff] }
 0x2c7   : > { %v1796_v42 = vpop.permute.xlu1 %1795  ;;  %v2042_v46 = vmul.f32 %v2040_v52, %v2667_v30  ;;  %v1890_v59 = vrot.slane %v1865_v39, %v2653_v24  ;;  %v2044_v30 = vmul.f32 %v2040_v52, %v2673_v32  ;;  %v3237_v39 = vld [vmem:[#allocation8_spill] sm:$0xff] }
 0x2c8   : > { %1772 = vrot.lane.b32.xlu1 %v1763_v49, %s2485_s30  ;;  %1770 = vrot.lane.b32.xlu0 %v1762_v51, %s2485_s30  ;;  %v1849_v1 = vmul.f32 %v1844_v48, %v1796_v42  ;;  %v1846_v6 = vmul.f32 %v1832_v8, %v1796_v42  ;;  %v1845_v44 = vmul.f32 %v1828_v55, %v1796_v42  ;;  %v3234_v48 = vld [vmem:[#allocation5_spill] sm:$0xff]  ;;  %v3238_v55 = vld [vmem:[#allocation12_spill] sm:$0xff] }
 0x2c9   : > { %v1848_v17 = vmul.f32 %v1840_v15, %v1796_v42  ;;  %v1836_v49 = vrot.slane %v1811_v0, %v2636_v12 }
 0x2cc   : > { %1776 = vrot.lane.b32.xlu1 %v1765_v25, %s2485_s30  ;;  %1774 = vrot.lane.b32.xlu0 %v1764_v9, %s2485_s30  ;;  %v1852_v23 = vpop.permute.xlu1 %1851  ;;  %v3232_v9 = vld [vmem:[#allocation6_spill] sm:$0xff] }
 0x2cd   : > { %v1903_v4 = vmul.f32 %v1898_v45, %v1852_v23  ;;  %v1900_v36 = vmul.f32 %v1886_v19, %v1852_v23  ;;  %v1899_v43 = vmul.f32 %v1882_v22, %v1852_v23  ;;  %v1902_v14 = vmul.f32 %v1894_v53, %v1852_v23  ;;  %v3235_v19 = vld [vmem:[#allocation9_spill] sm:$0xff] }
 0x2ce   : > { %v1901_v51 = vmul.f32 %v1890_v59, %v1852_v23  ;;  %v2079_v23 = vmul.f32 %v2077_v63, %v3235_v19  ;;  %v2046_v22 = vmul.f32 %v2040_v52, %v3236_v40 }
 0x2cf   : > { %v1908_v41 = vadd.f32 %v1903_v4, %v1849_v1  ;;  %v1905_v50 = vadd.f32 %v1900_v36, %v1846_v6  ;;  %v1904_v56 = vadd.f32 %v1899_v43, %v1845_v44  ;;  %v1907_v21 = vadd.f32 %v1902_v14, %v1848_v17  ;;  %v2020_v6 = vld [vmem:[%s3187_s11] sm:$0xff] }
 0x2d0   : > { %v2049_v11 = vpop.permute.xlu1 %2048  ;;  %v3241_v17 = vld [vmem:[#allocation13_spill] sm:$0xff] }
 0x2d1   : > { %1922 = vrot.lane.b32.xlu0 %v1908_v41, %s2486_s18  ;;  %v2051_v35 = vmul.f32 %v2049_v11, %v2710_v57  ;;  %v2052_v54 = vmul.f32 %v2049_v11, %v2713_v58  ;;  %1916 = vrot.lane.b32.xlu1 %v1905_v50, %s2486_s18  ;;  %v2053_v47 = vmul.f32 %v2049_v11, %v2723_v61  ;;  %v3239_v50 = vld [vmem:[#allocation7_spill] sm:$0xff] }
 0x2d2   : > { %v2054_v31 = vmul.f32 %v2049_v11, %v2726_v62  ;;  %v1847_v58 = vmul.f32 %v1836_v49, %v1796_v42  ;;  %v3233_v62 = vld [vmem:[#allocation10_spill] sm:$0xff]  ;;  %v2055_v1 = vmul.f32 %v2049_v11, %v3237_v39  ;;  %v2082_v41 = vmul.f32 %v2077_v63, %v3238_v55 }
 0x2d3   : > { %v2057_v25 = vadd.f32 %v2052_v54, %v2043_v20  ;;  %v2056_v32 = vadd.f32 %v2051_v35, %v2042_v46  ;;  %v2080_v34 = vmul.f32 %v2077_v63, %v3233_v62  ;;  %v2058_v4 = vadd.f32 %v2053_v47, %v2044_v30  ;;  %v3240_v46 = vld [vmem:[#allocation11_spill] sm:$0xff] }
 0x2d4   : > { %v1906_v61 = vadd.f32 %v1901_v51, %v1847_v58  ;;  %v2081_v44 = vmul.f32 %v2077_v63, %v3240_v46  ;;  %v2060_v52 = vadd.f32 %v2055_v1, %v2046_v22  ;;  %v1598_v58 = vpop.permute.xlu0 %1597 }
 0x2d5   : > { %1914 = vrot.lane.b32.xlu0 %v1904_v56, %s2486_s18  ;;  %v2063_v57 = vpop.permute.xlu1 %2062  ;;  %1920 = vrot.lane.b32.xlu1 %v1907_v21, %s2486_s18  ;;  %v2083_v56 = vmul.f32 %v2077_v63, %v3241_v17 }
 0x2d6   : > { %v2065_v28 = vmul.f32 %v2063_v57, %v2685_v38  ;;  %v2066_v7 = vmul.f32 %v2063_v57, %v3231_v5  ;;  %v2068_v3 = vmul.f32 %v2063_v57, %v3232_v9  ;;  %v2067_v45 = vmul.f32 %v2063_v57, %v3234_v48 }
 0x2d7   : > { %v2059_v38 = vadd.f32 %v2054_v31, %v2045_v37  ;;  %v2069_v43 = vmul.f32 %v2063_v57, %v3239_v50 }
 0x2d8   : > { %v2071_v42 = vadd.f32 %v2066_v7, %v2057_v25  ;;  %v2070_v8 = vadd.f32 %v2065_v28, %v2056_v32  ;;  %v2072_v14 = vadd.f32 %v2067_v45, %v2058_v4 }
 0x2d9   : > { %1918 = vrot.lane.b32.xlu0 %v1906_v61, %s2486_s18  ;;  %1958 = vperm.xlu1 %2447, %v1955_v33   ;;  %v2073_v53 = vadd.f32 %v2068_v3, %v2059_v38  ;;  %v2074_v54 = vadd.f32 %v2069_v43, %v2060_v52  ;;  %s2382_s18 = sshll.u32 %s3248_s21, 5 }
 0x2da   : > { %v2085_v36 = vadd.f32 %v2080_v34, %v2071_v42  ;;  %v2093_v0 = vpop.permute.xlu1 %2092  ;;  %v2084_v15 = vadd.f32 %v2079_v23, %v2070_v8  ;;  %v2086_v35 = vadd.f32 %v2081_v44, %v2072_v14  ;;  %s570_s25 = scalar_lea.vmem %s3190_s14, %s2382_s18 }
 0x2db   : > { %v2087_v59 = vadd.f32 %v2082_v41, %v2073_v53  ;;  %v2088_v30 = vadd.f32 %v2083_v56, %v2074_v54 }
 0x2dc   : > { %v2096_v11 = vadd.f32 %v2093_v0, %v2085_v36  ;;  %v2095_v20 = vadd.f32 %v2093_v0, %v2084_v15  ;;  %v2097_v51 = vadd.f32 %v2093_v0, %v2086_v35 }
 0x2dd   : > { %1987 = vperm.xlu0 %2448, %v1955_v33   ;;  %2023 = vperm.xlu1 %2447, %v2020_v6   ;;  %v2098_v49 = vadd.f32 %v2093_v0, %v2087_v59  ;;  %v2099_v21 = vadd.f32 %v2093_v0, %v2088_v30 }
 0x2de   : > { %v1541_v37 = vpop.permute.xlu1 %1540 }
 0x2df   : > { %v1542_v31 = vrot.slane %v1541_v37, 6 }
 0x2e1   : > { %2107 = vrot.lane.b32.xlu0 %v2096_v11, %s2487_s27  ;;  %2105 = vrot.lane.b32.xlu1 %v2095_v20, %s2487_s27  ;;  %v1544_v63 = vsel %vm1543_vm0, %v1542_v31, %v1541_v37  ;;  %v1548_v48 = vmul.f32 %v1542_v31, %v2996_v60 }
 0x2e2   : > { %2449 = vset.pattern.permute.xlu0 %v3225_v10  ;;  %v1654_v47 = vpop.permute.xlu1 %1653  ;;  %v1547_v28 = vmul.f32 %v1544_v63, %v2994_v2 }
 0x2e3   : > { %v1621_v60 = vrot.slane %v1548_v48, %v2636_v12  ;;  %v1675_v23 = vrot.slane %v1548_v48, %v2653_v24 }
 0x2e4   : > { %v1605_v7 = vrot.slane %v1547_v28, %v2636_v12  ;;  %v1659_v25 = vrot.slane %v1547_v28, %v2653_v24  ;;  %v1609_v32 = vrot.slane %v1547_v28, %v2642_v16  ;;  %v1663_v9 = vrot.slane %v1547_v28, %v2660_v27 }
 0x2e5   : > { %2111 = vrot.lane.b32.xlu0 %v2098_v49, %s2487_s27  ;;  %2109 = vrot.lane.b32.xlu1 %v2097_v51, %s2487_s27  ;;  %v1613_v61 = vrot.slane %v1547_v28, %v2639_v13  ;;  %v1667_v62 = vrot.slane %v1547_v28, %v2657_v26  ;;  %v1617_v34 = vrot.slane %v1547_v28, %v2645_v18 }
 0x2e6   : > { %v1671_v2 = vrot.slane %v1547_v28, %v2664_v29  ;;  %v1630_v45 = vrot.slane %v1605_v7, %v2636_v12  ;;  %v1684_v42 = vrot.slane %v1659_v25, %v2653_v24  ;;  %v1634_v16 = vrot.slane %v1609_v32, %v2636_v12 }
 0x2e7   : > { %v3082_v57 = vpop.permute.xlu1 %1942  ;;  %v1688_v27 = vrot.slane %v1663_v9, %v2653_v24  ;;  %v1638_v8 = vrot.slane %v1613_v61, %v2636_v12  ;;  %v1692_v13 = vrot.slane %v1667_v62, %v2653_v24  ;;  %v1642_v26 = vrot.slane %v1617_v34, %v2636_v12 }
 0x2e8   : > { %v1696_v18 = vrot.slane %v1671_v2, %v2653_v24  ;;  %v1647_v38 = vmul.f32 %v1630_v45, %v1598_v58  ;;  %v1701_v40 = vmul.f32 %v1684_v42, %v1654_v47  ;;  %v1648_v22 = vmul.f32 %v1634_v16, %v1598_v58 }
 0x2e9   : > { %2113 = vrot.lane.b32.xlu1 %v2099_v21, %s2487_s27  ;;  %v1702_v39 = vmul.f32 %v1688_v27, %v1654_v47  ;;  %v1649_v1 = vmul.f32 %v1638_v8, %v1598_v58  ;;  %v1703_v4 = vmul.f32 %v1692_v13, %v1654_v47  ;;  %v1650_v6 = vmul.f32 %v1642_v26, %v1598_v58 }
 0x2ea   : > { %v1704_v36 = vmul.f32 %v1696_v18, %v1654_v47  ;;  %v1646_v41 = vrot.slane %v1621_v60, %v2636_v12  ;;  %v1706_v50 = vadd.f32 %v1701_v40, %v1647_v38  ;;  %v1700_v15 = vrot.slane %v1675_v23, %v2653_v24 }
 0x2eb   : > { %v1707_v43 = vadd.f32 %v1702_v39, %v1648_v22  ;;  %v1708_v46 = vadd.f32 %v1703_v4, %v1649_v1 }
 0x2ec   : > { %v1709_v44 = vadd.f32 %v1704_v36, %v1650_v6  ;;  %v1651_v49 = vmul.f32 %v1646_v41, %v1598_v58  ;;  %v1705_v30 = vmul.f32 %v1700_v15, %v1654_v47 }
 0x33a   : > { %v1771_v5 = vpop.permute.xlu0 %1770  ;;  %v1773_v10 = vpop.permute.xlu1 %1772 }
 0x33b   : > { %v1778_v55 = vsel %vm1543_vm0, %v1771_v5, %v1773_v10  ;;  %v1786_v20 = vadd.f32 %v1771_v5, %v1706_v50 }
 0x33c   : > { %v1787_v35 = vadd.f32 %v1778_v55, %v1707_v43 }
 0x33e   : > { %v1775_v3 = vpop.permute.xlu0 %1774  ;;  %v1777_v33 = vpop.permute.xlu1 %1776 }
 0x33f   : > { %v1779_v0 = vsel %vm1543_vm0, %v1773_v10, %v1775_v3  ;;  %v1780_v52 = vsel %vm1543_vm0, %v1775_v3, %v1777_v33  ;;  %v1710_v10 = vadd.f32 %v1705_v30, %v1651_v49 }
 0x340   : > { %v1788_v56 = vadd.f32 %v1779_v0, %v1708_v46  ;;  %v1789_v21 = vadd.f32 %v1780_v52, %v1709_v44 }
 0x341   : > { %v1790_v32 = vadd.f32 %v1777_v33, %v1710_v10 }
 0x343   : > { %v1923_v19 = vpop.permute.xlu0 %1922  ;;  %v1917_v29 = vpop.permute.xlu1 %1916 }
 0x344   : > { %v1938_v3 = vadd.f32 %v1923_v19, %v1790_v32 }
 0x346   : > { %v1949_v2 = vadd.f32 %v3082_v57, %v1938_v3 }
 0x347   : > { %v1915_v53 = vpop.permute.xlu0 %1914  ;;  %v1921_v14 = vpop.permute.xlu1 %1920 }
 0x348   : > { %v1925_v11 = vsel %vm1924_vm1, %v1915_v53, %v1917_v29  ;;  %v1928_v51 = vsel %vm1924_vm1, %v1921_v14, %v1923_v19  ;;  %v1954_v38 = vmax.f32 %v1949_v2, 0.0 }
 0x349   : > { %v1934_v37 = vadd.f32 %v1925_v11, %v1786_v20  ;;  %v1937_v28 = vadd.f32 %v1928_v51, %v1789_v21 }
 0x34a   : > { %v2009_v43 = vrot.slane %v1954_v38, %v2653_v24  ;;  %v1980_v52 = vrot.slane %v1954_v38, %v2636_v12 }
 0x34b   : > { %v1919_v59 = vpop.permute.xlu0 %1918  ;;  %v1945_v7 = vadd.f32 %v3082_v57, %v1934_v37  ;;  %v1948_v9 = vadd.f32 %v3082_v57, %v1937_v28 }
 0x34c   : > { %v1926_v54 = vsel %vm1924_vm1, %v1917_v29, %v1919_v59  ;;  %v1927_v17 = vsel %vm1924_vm1, %v1919_v59, %v1921_v14 }
 0x34d   : > { %v1935_v31 = vadd.f32 %v1926_v54, %v1787_v35  ;;  %v1936_v63 = vadd.f32 %v1927_v17, %v1788_v56  ;;  %v1950_v58 = vmax.f32 %v1945_v7, 0.0  ;;  %v1953_v47 = vmax.f32 %v1948_v9, 0.0 }
 0x34f   : > { %v1946_v5 = vadd.f32 %v3082_v57, %v1935_v31  ;;  %v1947_v25 = vadd.f32 %v3082_v57, %v1936_v63  ;;  %v1964_v48 = vrot.slane %v1950_v58, %v2636_v12  ;;  %v1993_v42 = vrot.slane %v1950_v58, %v2653_v24 }
 0x350   : > { %v2005_v8 = vrot.slane %v1953_v47, %v2653_v24  ;;  %v1976_v40 = vrot.slane %v1953_v47, %v2636_v12 }
 0x351   : > { %v1951_v61 = vmax.f32 %v1946_v5, 0.0  ;;  %v1952_v62 = vmax.f32 %v1947_v25, 0.0  ;;  %v3242_v25 = vmov 0.0  }
 0x352   : > { %2162 = vst.msk [vmem:[%s3139_s17] sm:$0xff] %vm2161_vm3, %v3242_v25 }
 0x353   : > { %v1968_v45 = vrot.slane %v1951_v61, %v2636_v12  ;;  %v1972_v16 = vrot.slane %v1952_v62, %v2636_v12  ;;  %v1997_v33 = vrot.slane %v1951_v61, %v2653_v24  ;;  %v2001_v27 = vrot.slane %v1952_v62, %v2653_v24 }
 0x358   : > { %v1959_v34 = vpop.permute.xlu1 %1958 }
 0x359   : > { %v1981_v13 = vmul.f32 %v1964_v48, %v1959_v34  ;;  %v1982_v26 = vmul.f32 %v1968_v45, %v1959_v34  ;;  %v1983_v19 = vmul.f32 %v1972_v16, %v1959_v34  ;;  %v1984_v36 = vmul.f32 %v1976_v40, %v1959_v34 }
 0x35a   : > { %v1985_v24 = vmul.f32 %v1980_v52, %v1959_v34 }
 0x35c   : > { %v1988_v18 = vpop.permute.xlu0 %1987  ;;  %v2024_v23 = vpop.permute.xlu1 %2023 }
 0x35d   : > { %v2010_v29 = vmul.f32 %v1993_v42, %v1988_v18  ;;  %v2011_v57 = vmul.f32 %v1997_v33, %v1988_v18  ;;  %v2012_v60 = vmul.f32 %v2001_v27, %v1988_v18  ;;  %v2013_v22 = vmul.f32 %v2005_v8, %v1988_v18 }
 0x35e   : > { %v2014_v35 = vmul.f32 %v2009_v43, %v1988_v18 }
 0x35f   : > { %v2015_v39 = vadd.f32 %v2010_v29, %v1981_v13  ;;  %v2016_v1 = vadd.f32 %v2011_v57, %v1982_v26  ;;  %v2017_v4 = vadd.f32 %v2012_v60, %v1983_v19  ;;  %v2018_v14 = vadd.f32 %v2013_v22, %v1984_v36 }
 0x360   : > { %v2108_v6 = vpop.permute.xlu0 %2107  ;;  %v2106_v55 = vpop.permute.xlu1 %2105  ;;  %v2019_v30 = vadd.f32 %v2014_v35, %v1985_v24 }
 0x361   : > { %v2026_v53 = vadd.f32 %v2024_v23, %v2015_v39  ;;  %v2027_v41 = vadd.f32 %v2024_v23, %v2016_v1  ;;  %v2028_v50 = vadd.f32 %v2024_v23, %v2017_v4  ;;  %v2116_v46 = vsel %vm2115_vm2, %v2106_v55, %v2108_v6  ;;  %v2164_v39 = vld [vmem:[%s3139_s17] sm:$0xff] }
 0x362   : > { %v2029_v49 = vadd.f32 %v2024_v23, %v2018_v14  ;;  %v2030_v63 = vadd.f32 %v2024_v23, %v2019_v30 }
 0x363   : > { %v2031_v0 = vmax.f32 %v2026_v53, 0.0  ;;  %v2032_v15 = vmax.f32 %v2027_v41, 0.0  ;;  %v2033_v59 = vmax.f32 %v2028_v50, 0.0 }
 0x364   : > { %v2112_v44 = vpop.permute.xlu0 %2111  ;;  %v2110_v20 = vpop.permute.xlu1 %2109  ;;  %v2034_v37 = vmax.f32 %v2029_v49, 0.0  ;;  %v2035_v7 = vmax.f32 %v2030_v63, 0.0 }
 0x365   : > { %v2125_v11 = vadd.f32 %v2116_v46, %v2031_v0  ;;  %v2117_v54 = vsel %vm2115_vm2, %v2108_v6, %v2110_v20  ;;  %v2118_v17 = vsel %vm2115_vm2, %v2110_v20, %v2112_v44 }
 0x366   : > { %v2126_v56 = vadd.f32 %v2117_v54, %v2032_v15  ;;  %v2127_v51 = vadd.f32 %v2118_v17, %v2033_v59 }
 0x367   : > { %2135 = vrot.lane.b32.xlu0 %v2125_v11, %s2488_s28  ;;  %v2174_v31 = vmul.f32 %v2125_v11, %v2125_v11 }
 0x368   : > { %2137 = vrot.lane.b32.xlu1 %v2126_v56, %s2488_s28  ;;  %v2114_v21 = vpop.permute.xlu1 %2113  ;;  %v2176_v10 = vmul.f32 %v2127_v51, %v2127_v51  ;;  %v2175_v5 = vmul.f32 %v2126_v56, %v2126_v56 }
 0x369   : > { %v2119_v12 = vsel %vm2115_vm2, %v2112_v44, %v2114_v21  ;;  %v2129_v32 = vadd.f32 %v2114_v21, %v2035_v7 }
 0x36a   : > { %v2128_v28 = vadd.f32 %v2119_v12, %v2034_v37 }
 0x36b   : > { %2139 = vrot.lane.b32.xlu0 %v2127_v51, %s2488_s28  ;;  %v2178_v3 = vmul.f32 %v2129_v32, %v2129_v32 }
 0x36c   : > { %2184 = vrot.lane.b32.xlu1 %v2174_v31, %s2488_s28  ;;  %v2177_v9 = vmul.f32 %v2128_v28, %v2128_v28 }
 0x36f   : > { %2141 = vrot.lane.b32.xlu0 %v2128_v28, %s2488_s28 }
 0x370   : > { %2188 = vrot.lane.b32.xlu1 %v2176_v10, %s2488_s28 }
 0x373   : > { %2186 = vrot.lane.b32.xlu0 %v2175_v5, %s2488_s28 }
 0x374   : > { %2190 = vrot.lane.b32.xlu1 %v2177_v9, %s2488_s28 }
 0x377   : > { %2143 = vrot.lane.b32.xlu0 %v2129_v32, %s2488_s28 }
 0x378   : > { %2192 = vrot.lane.b32.xlu1 %v2178_v3, %s2488_s28  ;;  %s579_s28 = scalar_lea.vmem %s3192_s16, %s2369_s29 }
 0x379   : > { %2163 = vst.msk [vmem:[%s579_s28] sm:$0xff] %vm2161_vm3, %v3242_v25 }
 0x380   : > { %v2173_v4 = vld [vmem:[%s579_s28] sm:$0xff] }
 0x3d9   : > { %v2136_v58 = vpop.permute.xlu0 %2135 }
 0x3da   : > { %v2138_v61 = vpop.permute.xlu1 %2137 }
 0x3db   : > { %v2146_v62 = vsel %vm2145_vm4, %v2136_v58, %v2138_v61 }
 0x3dc   : > { %2154 = vst [vmem:[%s570_s25] sm:$0xff] %v2146_v62 }
 0x3dd   : > { %v2140_v47 = vpop.permute.xlu0 %2139 }
 0x3de   : > { %v2147_v34 = vsel %vm2145_vm4, %v2138_v61, %v2140_v47  ;;  %v2185_v2 = vpop.permute.xlu1 %2184 }
 0x3df   : > { %2155 = vst [vmem:[%s570_s25 + $0x8] sm:$0xff] %v2147_v34  ;;  %v2165_v8 = vadd.f32 %v2147_v34, %v2146_v62 }
 0x3e1   : > { %v2142_v48 = vpop.permute.xlu0 %2141 }
 0x3e2   : > { %v2148_v45 = vsel %vm2145_vm4, %v2140_v47, %v2142_v48  ;;  %v2189_v42 = vpop.permute.xlu1 %2188 }
 0x3e3   : > { %2156 = vst [vmem:[%s570_s25 + $0x10] sm:$0xff] %v2148_v45  ;;  %v2166_v19 = vadd.f32 %v2165_v8, %v2148_v45 }
 0x3e5   : > { %v2187_v16 = vpop.permute.xlu0 %2186 }
 0x3e6   : > { %v2194_v33 = vsel %vm2145_vm4, %v2185_v2, %v2187_v16  ;;  %v2195_v27 = vsel %vm2145_vm4, %v2187_v16, %v2189_v42  ;;  %v2191_v26 = vpop.permute.xlu1 %2190 }
 0x3e7   : > { %v2202_v13 = vadd.f32 %v2195_v27, %v2194_v33  ;;  %v2196_v18 = vsel %vm2145_vm4, %v2189_v42, %v2191_v26 }
 0x3e9   : > { %v2203_v29 = vadd.f32 %v2202_v13, %v2196_v18  ;;  %v2144_v57 = vpop.permute.xlu0 %2143 }
 0x3ea   : > { %v2149_v60 = vsel %vm2145_vm4, %v2142_v48, %v2144_v57  ;;  %v2193_v23 = vpop.permute.xlu1 %2192 }
 0x3eb   : > { %2157 = vst [vmem:[%s570_s25 + $0x18] sm:$0xff] %v2149_v60  ;;  %v2167_v38 = vadd.f32 %v2166_v19, %v2149_v60  ;;  %v2197_v40 = vsel %vm2145_vm4, %v2191_v26, %v2193_v23 }
 0x3ec   : > { %v2204_v22 = vadd.f32 %v2203_v29, %v2197_v40 }
 0x3ed   : > { %2168 = vadd.xlane.f32.xlu0 %v2167_v38 }
 0x3ee   : > { %2205 = vadd.xlane.f32.xlu1 %v2204_v22 }
 0x47a   : > { %v2169_v1 = vpop.xlane.xlu0 %2168 }
 0x47b   : > { %v2170_v6 = vadd.f32 %v2169_v1, %v2164_v39  ;;  %v2206_v36 = vpop.xlane.xlu1 %2205 }
 0x47c   : > { %v2207_v53 = vadd.f32 %v2206_v36, %v2173_v4 }
 0x47d   : > { %2172 = vst.msk [vmem:[%s3139_s17] sm:$0xff] %vm2161_vm3, %v2170_v6 }
 0x47e   : > { %2208 = vst.msk [vmem:[%s579_s28] sm:$0xff] %vm2161_vm3, %v2207_v53 }
 0x47f PF: > { %s27_s23 = sadd.s32 1, %s2472_s23   ;;  %s3243_s21 = smov %s2468_s22 }
 0x480   : > { %p24_p5 = scmp.ge.s32.totalorder %s27_s23, 4   ;;  %s3244_s22 = smov %s3246_s24 }
 0x482   :  { %26 = sbr.rel (!%p24_p5) target bundleno = 2 (0x2), region = 143 }

</bundles_post_ra>
